<compile_context>
chip_gen: v7x
topology: tpu7x:2x2x1
jax: 0.10.0
libtpu: 0.0.40
codegen_flags: <defaults>
</compile_context>

<pallas_src>
import functools

import jax
import jax.numpy as jnp
from jax.experimental import pallas as pl
from jax.experimental.pallas import tpu as pltpu


# ------------------------------------------------------------------ kernel ---

def critic_fused_kernel(
    # activations (batch padded to Bp = multiple of 8 so all row slices are aligned)
    p1_ref,        # (4*Bp, 108)  conv1 im2col: rows=(pool-inner pos, batch), cols=(pool-out pos, dh,dw,c)
    ids_ref,       # (L*Bp, 1)    int32 LTL token ids, rows=(t, batch)
    extras_ref,    # (Bp, A+T+1)  [agent_id | task | actions]
    # image conv weights (im2col / pre-blocked layouts, see make_params)
    w1_ref, b1_ref,     # (108,144), (1,144)  conv1 on all 9 pool windows at once (block-diagonal)
    w2_ref, b2_ref,     # (144,128), (1,128)  conv2 on all 4 output positions at once
    w3_ref, b3_ref,     # (128, 64), (1, 64)  conv3 (2x2 input -> plain linear)
    # LTL embedder + GRU layer 0 (fwd/bwd stacked on dim 0; gates (r,z,n) concatenated on lanes)
    emb_ref,            # (20, 8)
    wi_ref, bi_ref,     # (2, 8, 96), (2, 1, 96)
    wh_ref, bh_ref,     # (2, 32, 96), (2, 1, 96)
    # critic head, wc1 pre-split into row blocks (torch concat order preserved)
    we_ref, whf_ref, whb_ref, wex_ref, bc1_ref,   # (64,64),(32,64),(32,64),(A+T+1,64),(1,64)
    wc2_ref, bc2_ref,                             # (64,out_dim), (1,out_dim)
    o_ref):                                       # (B, out_dim)
    f32 = jnp.float32
    Bp = extras_ref.shape[0]
    LBp = ids_ref.shape[0]
    L = LBp // Bp
    H = 32

    # ---- image conv stack: Conv(3,16,2)+ReLU -> MaxPool(2,2) -> Conv(16,32,2)+ReLU -> Conv(32,64,2)+ReLU
    y1 = jnp.dot(p1_ref[...], w1_ref[...], preferred_element_type=f32) + b1_ref[...]
    y1 = jnp.maximum(y1, 0.0)                                       # (4*Bp, 144): conv1+ReLU, all pool members
    pooled = jnp.maximum(jnp.maximum(y1[0:Bp], y1[Bp:2 * Bp]),
                         jnp.maximum(y1[2 * Bp:3 * Bp], y1[3 * Bp:4 * Bp]))   # (Bp,144) MaxPool2d(2,2)
    y2 = jnp.maximum(jnp.dot(pooled, w2_ref[...], preferred_element_type=f32)
                     + b2_ref[...], 0.0)                            # (Bp, 128) conv2+ReLU, cols=(oh,ow,c)
    embedding = jnp.maximum(jnp.dot(y2, w3_ref[...], preferred_element_type=f32)
                            + b3_ref[...], 0.0)                     # (Bp, 64)  conv3+ReLU

    # ---- Embedding(20,8,padding_idx=0) + bidirectional GRU layer 0.
    # PyTorch forward uses h[:-2] == layer-0 fwd/bwd final states only, so GRU
    # layer 1 never influences the returned value and is not computed.
    # All h-independent work (one-hot, embedding, input projections) is hoisted.
    ids = ids_ref[...]                                              # (L*Bp, 1) int32
    iota = jax.lax.broadcasted_iota(jnp.int32, (LBp, emb_ref.shape[0]), 1)
    onehot = (ids == iota).astype(f32)                              # (L*Bp, 20)
    x_all = jnp.dot(onehot, emb_ref[...], preferred_element_type=f32)           # (L*Bp, 8)
    gx_f = jnp.dot(x_all, wi_ref[0], preferred_element_type=f32) + bi_ref[0]    # (L*Bp, 96)
    gx_b = jnp.dot(x_all, wi_ref[1], preferred_element_type=f32) + bi_ref[1]    # (L*Bp, 96)

    wh_f, wh_b = wh_ref[0], wh_ref[1]
    bh_f = jnp.broadcast_to(bh_ref[0], (Bp, 3 * H))                 # bias broadcasts hoisted out of the loop
    bh_b = jnp.broadcast_to(bh_ref[1], (Bp, 3 * H))

    def gru_step(gx, h, wh, bh):
        # PyTorch GRU cell, packed gate order (r,z,n); n = tanh(gi_n + r*(W_hn h + b_hn))
        gh = jnp.dot(h, wh, preferred_element_type=f32) + bh        # single fused gate matmul
        r = jax.nn.sigmoid(gx[:, 0:H] + gh[:, 0:H])
        z = jax.nn.sigmoid(gx[:, H:2 * H] + gh[:, H:2 * H])
        n = jnp.tanh(gx[:, 2 * H:3 * H] + r * gh[:, 2 * H:3 * H])
        return n + z * (h - n)                                      # == (1-z)*n + z*h

    hf = jnp.zeros((Bp, H), f32)
    hb = jnp.zeros((Bp, H), f32)
    for t in range(L):                                              # static unroll; serial recurrence
        hf = gru_step(gx_f[t * Bp:(t + 1) * Bp], hf, wh_f, bh_f)
        hb = gru_step(gx_b[(L - 1 - t) * Bp:(L - t) * Bp], hb, wh_b, bh_b)

    # ---- critic head on joint = [agent_id, embedding, task, hf, hb, actions]
    # (concat replaced by a sum of per-block matmuls; block order matches torch).
    h1 = (jnp.dot(embedding, we_ref[...], preferred_element_type=f32)
          + jnp.dot(hf, whf_ref[...], preferred_element_type=f32)
          + jnp.dot(hb, whb_ref[...], preferred_element_type=f32)
          + jnp.dot(extras_ref[...], wex_ref[...], preferred_element_type=f32)
          + bc1_ref[...])
    h1 = jnp.tanh(h1)
    out = jnp.dot(h1, wc2_ref[...], preferred_element_type=f32) + bc2_ref[...]
    o_ref[...] = out[:o_ref.shape[0], :]                            # drop batch padding rows


# ----------------------------------------------------------------- helpers ---

def conv_patches(x, kh, kw):
    # Extract (kh, kw) patches of an NHWC tensor, features flattened in (dh, dw, c) order.
    B, H, W, C = x.shape
    Ho, Wo = H - kh + 1, W - kw + 1
    cols = []
    for di in range(kh):
        for dj in range(kw):
            cols.append(x[:, di:di + Ho, dj:dj + Wo, :])
    return jnp.concatenate(cols, axis=-1)          # (B, Ho, Wo, kh*kw*C)


# ------------------------------------------------------------- parameters ---

def make_params(key, num_agents, num_tasks, n_actions):
    ks = jax.random.split(key, 16)
    f32 = jnp.float32
    A, T = num_agents, num_tasks
    E = A + 64 + T + 64 + 1
    out_dim = n_actions * (T + 1)

    def nrm(k, shape, scale=0.1):
        return scale * jax.random.normal(k, shape, f32)

    p = {}
    # ---- image_conv weights, stored in im2col layouts (rows ordered (kh,kw,cin), cin fastest).
    # TODO(synk): importing real torch Conv2d weights requires w.permute(2,3,1,0).reshape(kh*kw*cin, cout).
    w1 = nrm(ks[0], (2 * 2 * 3, 16))
    b1 = jnp.zeros((1, 16), f32)
    p["w1big"] = jnp.kron(jnp.eye(9, dtype=f32), w1)       # (108,144): conv1 on all 9 pool windows at once
    p["b1big"] = jnp.tile(b1, (1, 9))                      # (1,144)

    w2 = nrm(ks[1], (2, 2, 16, 32))                        # (dh, dw, cin, cout)
    b2 = jnp.zeros((1, 32), f32)
    w2big = jnp.zeros((9 * 16, 4 * 32), f32)               # rows=(pooled h*3+w, cin), cols=(oh*2+ow, cout)
    for oh in range(2):
        for ow in range(2):
            for dh in range(2):
                for dw in range(2):
                    h, w = oh + dh, ow + dw
                    w2big = w2big.at[(h * 3 + w) * 16:(h * 3 + w + 1) * 16,
                                     (oh * 2 + ow) * 32:(oh * 2 + ow + 1) * 32].set(w2[dh, dw])
    p["w2big"] = w2big
    p["b2big"] = jnp.tile(b2, (1, 4))                      # (1,128)

    p["w3"] = nrm(ks[2], (2 * 2 * 32, 64))                 # conv3 on a 2x2 input == plain linear
    p["b3"] = jnp.zeros((1, 64), f32)

    # ---- ltl embedder (padding_idx=0 -> row 0 zero)
    emb = nrm(ks[3], (20, 8), 1.0)
    p["emb"] = emb.at[0].set(0.0)

    # ---- GRU layer 0 (fwd / bwd), gate order (r, z, n) concatenated along columns.
    # TODO(synk): GRU layer-1 parameters exist in the torch module but h[:-2] discards layer 1.
    def gru_dir(k):
        k1, k2, k3, k4 = jax.random.split(k, 4)
        wi = nrm(k1, (3, 8, 32));  wh = nrm(k2, (3, 32, 32))
        bi = nrm(k3, (3, 1, 32));  bh = nrm(k4, (3, 1, 32))
        cat = lambda a: jnp.transpose(a, (1, 0, 2)).reshape(a.shape[1], 3 * 32)
        return cat(wi), cat(bi), cat(wh), cat(bh)

    wif, bif, whf, bhf = gru_dir(ks[4])
    wib, bib, whb, bhb = gru_dir(ks[5])
    p["wi"] = jnp.stack([wif, wib])      # (2, 8, 96)
    p["bi"] = jnp.stack([bif, bib])      # (2, 1, 96)
    p["wh"] = jnp.stack([whf, whb])      # (2, 32, 96)
    p["bh"] = jnp.stack([bhf, bhb])      # (2, 1, 96)

    # ---- critic MLP -- init_params: N(0,1) rows normalized to unit L2 norm, zero bias.
    wc1 = jax.random.normal(ks[6], (64, E), f32)
    wc1 = wc1 / jnp.sqrt(jnp.sum(wc1 ** 2, axis=1, keepdims=True))
    wc1T = wc1.T                                           # (E, 64), rows in torch concat order
    p["we"] = wc1T[A:A + 64]                               # embedding block
    p["whf"] = wc1T[A + 64 + T:A + 64 + T + 32]            # GRU forward final-state block
    p["whb"] = wc1T[A + 64 + T + 32:A + 64 + T + 64]       # GRU backward final-state block
    p["wex"] = jnp.concatenate([wc1T[0:A],                 # agent_id block
                                wc1T[A + 64:A + 64 + T],   # task block
                                wc1T[E - 1:E]], axis=0)    # actions block
    p["bc1"] = jnp.zeros((1, 64), f32)

    wc2 = jax.random.normal(ks[7], (out_dim, 64), f32)
    wc2 = wc2 / jnp.sqrt(jnp.sum(wc2 ** 2, axis=1, keepdims=True))
    p["wc2"] = wc2.T
    p["bc2"] = jnp.zeros((1, out_dim), f32)
    return p


# ----------------------------------------------------------------- forward ---

def critic_forward(params, inp, actions, agent_id, *, num_tasks, n_actions):
    f32 = jnp.float32
    B = inp.shape[0]
    Bp = ((B + 7) // 8) * 8            # pad batch to a sublane multiple -> aligned in-kernel slices
    objectives = num_tasks + 1
    out_dim = n_actions * objectives

    img = inp[:, :147]
    task = inp[:, 147:147 + num_tasks]
    ltl = inp[:, 147 + num_tasks:].astype(jnp.int32)       # ltl.to(torch.long)
    L = ltl.shape[1]

    def pad_rows(a):
        return jnp.pad(a, ((0, Bp - B), (0, 0)))

    # conv1 im2col, laid out so maxpool == max over 4 aligned row blocks inside the kernel:
    #   rows = (pool-inner (a,b), batch), cols = (pool-out (i,j), patch features (dh,dw,c))
    x = pad_rows(img).reshape(Bp, 7, 7, 3)                              # NHWC
    pat = conv_patches(x, 2, 2)                                         # (Bp, 6, 6, 12)
    pat = pat.reshape(Bp, 3, 2, 3, 2, 12).transpose(2, 4, 0, 1, 3, 5)   # (a, b, batch, i, j, f)
    p1 = pat.reshape(4 * Bp, 9 * 12)                                    # (4*Bp, 108)

    ids_tb = pad_rows(ltl).T.reshape(L * Bp, 1)                         # rows = (t, batch)
    extras = jnp.concatenate([pad_rows(agent_id), pad_rows(task), pad_rows(actions)], axis=1)

    n_in = 21
    # B is tiny, so a single gridless call is right; at large B add a batch grid
    # axis with dimension_semantics=("parallel",) to use both v7x TensorCores.
    out = pl.pallas_call(
        critic_fused_kernel,
        out_shape=jax.ShapeDtypeStruct((B, out_dim), f32),
        in_specs=[pl.BlockSpec(memory_space=pltpu.MemorySpace.VMEM)] * n_in,
        out_specs=pl.BlockSpec(memory_space=pltpu.MemorySpace.VMEM),
    )(p1, ids_tb, extras,
      params["w1big"], params["b1big"], params["w2big"], params["b2big"],
      params["w3"], params["b3"],
      params["emb"], params["wi"], params["bi"], params["wh"], params["bh"],
      params["we"], params["whf"], params["whb"], params["wex"], params["bc1"],
      params["wc2"], params["bc2"])
    return out.reshape(B, n_actions, objectives)


# -------------------------------------------------------------------- main ---

if __name__ == "__main__":
    num_agents, num_tasks, n_actions, seq_len = 3, 4, 5, 8
    B = 4

    key = jax.random.PRNGKey(0)
    kp, ki, kt, kl, ka = jax.random.split(key, 5)
    params = make_params(kp, num_agents, num_tasks, n_actions)

    img = jax.random.uniform(ki, (B, 147), jnp.float32)
    task = jax.random.uniform(kt, (B, num_tasks), jnp.float32)
    ltl_tokens = jax.random.randint(kl, (B, seq_len), 0, 20).astype(jnp.float32)
    inp = jnp.concatenate([img, task, ltl_tokens], axis=1)            # (B, 159)
    agent_id = jax.nn.one_hot(jnp.arange(B) % num_agents, num_agents, dtype=jnp.float32)
    actions = jax.random.randint(ka, (B, 1), 0, n_actions).astype(jnp.float32)

    fwd = jax.jit(functools.partial(critic_forward,
                                    num_tasks=num_tasks, n_actions=n_actions))
    value = fwd(params, inp, actions, agent_id)
    jax.block_until_ready(value)
    assert value.shape == (B, n_actions, num_tasks + 1)
    assert value.dtype == jnp.float32
    print("KERNEL_OK")
</pallas_src>

<mosaic_0001>
module attributes {stable_mosaic.version = 11 : i64} {
  func.func @critic_fused_kernel(%arg0: memref<32x108xf32, #tpu.memory_space<vmem>>, %arg1: memref<64x1xi32, #tpu.memory_space<vmem>>, %arg2: memref<8x8xf32, #tpu.memory_space<vmem>>, %arg3: memref<108x144xf32, #tpu.memory_space<vmem>>, %arg4: memref<1x144xf32, #tpu.memory_space<vmem>>, %arg5: memref<144x128xf32, #tpu.memory_space<vmem>>, %arg6: memref<1x128xf32, #tpu.memory_space<vmem>>, %arg7: memref<128x64xf32, #tpu.memory_space<vmem>>, %arg8: memref<1x64xf32, #tpu.memory_space<vmem>>, %arg9: memref<20x8xf32, #tpu.memory_space<vmem>>, %arg10: memref<2x8x96xf32, #tpu.memory_space<vmem>>, %arg11: memref<2x1x96xf32, #tpu.memory_space<vmem>>, %arg12: memref<2x32x96xf32, #tpu.memory_space<vmem>>, %arg13: memref<2x1x96xf32, #tpu.memory_space<vmem>>, %arg14: memref<64x64xf32, #tpu.memory_space<vmem>>, %arg15: memref<32x64xf32, #tpu.memory_space<vmem>>, %arg16: memref<32x64xf32, #tpu.memory_space<vmem>>, %arg17: memref<8x64xf32, #tpu.memory_space<vmem>>, %arg18: memref<1x64xf32, #tpu.memory_space<vmem>>, %arg19: memref<64x25xf32, #tpu.memory_space<vmem>>, %arg20: memref<1x25xf32, #tpu.memory_space<vmem>>, %arg21: memref<4x25xf32, #tpu.memory_space<vmem>>) attributes {dimension_semantics = [], scalar_prefetch = 0 : i64, scratch_operands = 0 : i64, tpu.core_type = #tpu.core_type<tc>} {
    %c0 = arith.constant 0 : index
    %c0_0 = arith.constant 0 : index
    %0 = vector.load %arg0[%c0, %c0_0] : memref<32x108xf32, #tpu.memory_space<vmem>>, vector<32x108xf32>
    %c0_1 = arith.constant 0 : index
    %c0_2 = arith.constant 0 : index
    %1 = vector.load %arg3[%c0_1, %c0_2] : memref<108x144xf32, #tpu.memory_space<vmem>>, vector<108x144xf32>
    %cst = arith.constant dense<0.000000e+00> : vector<32x144xf32>
    %2 = tpu.matmul %0, %1, %cst {dimension_numbers = #tpu.dot_dimension_numbers<[1], [0], [0], [1], [0, 0, 1, 1], [], []>} : vector<32x108xf32>, vector<108x144xf32>, vector<32x144xf32> -> vector<32x144xf32>
    %c0_3 = arith.constant 0 : index
    %c0_4 = arith.constant 0 : index
    %3 = vector.load %arg4[%c0_3, %c0_4] : memref<1x144xf32, #tpu.memory_space<vmem>>, vector<1x144xf32>
    %4 = vector.broadcast %3 : vector<1x144xf32> to vector<32x144xf32>
    %5 = arith.addf %2, %4 : vector<32x144xf32>
    %cst_5 = arith.constant 0.000000e+00 : f32
    %6 = vector.broadcast %cst_5 : f32 to vector<32x144xf32>
    %7 = arith.maximumf %5, %6 : vector<32x144xf32>
    %8 = vector.extract_strided_slice %7 {offsets = [0, 0], sizes = [8, 144], strides = [1, 1]} : vector<32x144xf32> to vector<8x144xf32>
    %9 = vector.extract_strided_slice %7 {offsets = [8, 0], sizes = [8, 144], strides = [1, 1]} : vector<32x144xf32> to vector<8x144xf32>
    %10 = arith.maximumf %8, %9 : vector<8x144xf32>
    %11 = vector.extract_strided_slice %7 {offsets = [16, 0], sizes = [8, 144], strides = [1, 1]} : vector<32x144xf32> to vector<8x144xf32>
    %12 = vector.extract_strided_slice %7 {offsets = [24, 0], sizes = [8, 144], strides = [1, 1]} : vector<32x144xf32> to vector<8x144xf32>
    %13 = arith.maximumf %11, %12 : vector<8x144xf32>
    %14 = arith.maximumf %10, %13 : vector<8x144xf32>
    %c0_6 = arith.constant 0 : index
    %c0_7 = arith.constant 0 : index
    %15 = vector.load %arg5[%c0_6, %c0_7] : memref<144x128xf32, #tpu.memory_space<vmem>>, vector<144x128xf32>
    %cst_8 = arith.constant dense<0.000000e+00> : vector<8x128xf32>
    %16 = tpu.matmul %14, %15, %cst_8 {dimension_numbers = #tpu.dot_dimension_numbers<[1], [0], [0], [1], [0, 0, 1, 1], [], []>} : vector<8x144xf32>, vector<144x128xf32>, vector<8x128xf32> -> vector<8x128xf32>
    %c0_9 = arith.constant 0 : index
    %c0_10 = arith.constant 0 : index
    %17 = vector.load %arg6[%c0_9, %c0_10] : memref<1x128xf32, #tpu.memory_space<vmem>>, vector<1x128xf32>
    %18 = vector.broadcast %17 : vector<1x128xf32> to vector<8x128xf32>
    %19 = arith.addf %16, %18 : vector<8x128xf32>
    %cst_11 = arith.constant 0.000000e+00 : f32
    %20 = vector.broadcast %cst_11 : f32 to vector<8x128xf32>
    %21 = arith.maximumf %19, %20 : vector<8x128xf32>
    %c0_12 = arith.constant 0 : index
    %c0_13 = arith.constant 0 : index
    %22 = vector.load %arg7[%c0_12, %c0_13] : memref<128x64xf32, #tpu.memory_space<vmem>>, vector<128x64xf32>
    %cst_14 = arith.constant dense<0.000000e+00> : vector<8x64xf32>
    %23 = tpu.matmul %21, %22, %cst_14 {dimension_numbers = #tpu.dot_dimension_numbers<[1], [0], [0], [1], [0, 0, 1, 1], [], []>} : vector<8x128xf32>, vector<128x64xf32>, vector<8x64xf32> -> vector<8x64xf32>
    %c0_15 = arith.constant 0 : index
    %c0_16 = arith.constant 0 : index
    %24 = vector.load %arg8[%c0_15, %c0_16] : memref<1x64xf32, #tpu.memory_space<vmem>>, vector<1x64xf32>
    %25 = vector.broadcast %24 : vector<1x64xf32> to vector<8x64xf32>
    %26 = arith.addf %23, %25 : vector<8x64xf32>
    %cst_17 = arith.constant 0.000000e+00 : f32
    %27 = vector.broadcast %cst_17 : f32 to vector<8x64xf32>
    %28 = arith.maximumf %26, %27 : vector<8x64xf32>
    %c0_18 = arith.constant 0 : index
    %c0_19 = arith.constant 0 : index
    %29 = vector.load %arg1[%c0_18, %c0_19] : memref<64x1xi32, #tpu.memory_space<vmem>>, vector<64x1xi32>
    %30 = tpu.iota {dimensions = array<i32: 1>} : vector<64x20xi32>
    %31 = vector.broadcast %29 : vector<64x1xi32> to vector<64x20xi32>
    %32 = arith.cmpi eq, %31, %30 : vector<64x20xi32>
    %33 = arith.extui %32 : vector<64x20xi1> to vector<64x20xi32>
    %34 = arith.sitofp %33 : vector<64x20xi32> to vector<64x20xf32>
    %c0_20 = arith.constant 0 : index
    %c0_21 = arith.constant 0 : index
    %35 = vector.load %arg9[%c0_20, %c0_21] : memref<20x8xf32, #tpu.memory_space<vmem>>, vector<20x8xf32>
    %cst_22 = arith.constant dense<0.000000e+00> : vector<64x8xf32>
    %36 = tpu.matmul %34, %35, %cst_22 {dimension_numbers = #tpu.dot_dimension_numbers<[1], [0], [0], [1], [0, 0, 1, 1], [], []>} : vector<64x20xf32>, vector<20x8xf32>, vector<64x8xf32> -> vector<64x8xf32>
    %c0_23 = arith.constant 0 : index
    %c0_24 = arith.constant 0 : index
    %c0_25 = arith.constant 0 : index
    %37 = vector.load %arg10[%c0_23, %c0_24, %c0_25] : memref<2x8x96xf32, #tpu.memory_space<vmem>>, vector<1x8x96xf32>
    %38 = vector.shape_cast %37 : vector<1x8x96xf32> to vector<8x96xf32>
    %cst_26 = arith.constant dense<0.000000e+00> : vector<64x96xf32>
    %39 = tpu.matmul %36, %38, %cst_26 {dimension_numbers = #tpu.dot_dimension_numbers<[1], [0], [0], [1], [0, 0, 1, 1], [], []>} : vector<64x8xf32>, vector<8x96xf32>, vector<64x96xf32> -> vector<64x96xf32>
    %c0_27 = arith.constant 0 : index
    %c0_28 = arith.constant 0 : index
    %c0_29 = arith.constant 0 : index
    %40 = vector.load %arg11[%c0_27, %c0_28, %c0_29] : memref<2x1x96xf32, #tpu.memory_space<vmem>>, vector<1x1x96xf32>
    %41 = vector.shape_cast %40 : vector<1x1x96xf32> to vector<1x96xf32>
    %42 = vector.broadcast %41 : vector<1x96xf32> to vector<64x96xf32>
    %43 = arith.addf %39, %42 : vector<64x96xf32>
    %c1 = arith.constant 1 : index
    %c0_30 = arith.constant 0 : index
    %c0_31 = arith.constant 0 : index
    %44 = vector.load %arg10[%c1, %c0_30, %c0_31] : memref<2x8x96xf32, #tpu.memory_space<vmem>>, vector<1x8x96xf32>
    %45 = vector.shape_cast %44 : vector<1x8x96xf32> to vector<8x96xf32>
    %cst_32 = arith.constant dense<0.000000e+00> : vector<64x96xf32>
    %46 = tpu.matmul %36, %45, %cst_32 {dimension_numbers = #tpu.dot_dimension_numbers<[1], [0], [0], [1], [0, 0, 1, 1], [], []>} : vector<64x8xf32>, vector<8x96xf32>, vector<64x96xf32> -> vector<64x96xf32>
    %c1_33 = arith.constant 1 : index
    %c0_34 = arith.constant 0 : index
    %c0_35 = arith.constant 0 : index
    %47 = vector.load %arg11[%c1_33, %c0_34, %c0_35] : memref<2x1x96xf32, #tpu.memory_space<vmem>>, vector<1x1x96xf32>
    %48 = vector.shape_cast %47 : vector<1x1x96xf32> to vector<1x96xf32>
    %49 = vector.broadcast %48 : vector<1x96xf32> to vector<64x96xf32>
    %50 = arith.addf %46, %49 : vector<64x96xf32>
    %c0_36 = arith.constant 0 : index
    %c0_37 = arith.constant 0 : index
    %c0_38 = arith.constant 0 : index
    %51 = vector.load %arg12[%c0_36, %c0_37, %c0_38] : memref<2x32x96xf32, #tpu.memory_space<vmem>>, vector<1x32x96xf32>
    %52 = vector.shape_cast %51 : vector<1x32x96xf32> to vector<32x96xf32>
    %c1_39 = arith.constant 1 : index
    %c0_40 = arith.constant 0 : index
    %c0_41 = arith.constant 0 : index
    %53 = vector.load %arg12[%c1_39, %c0_40, %c0_41] : memref<2x32x96xf32, #tpu.memory_space<vmem>>, vector<1x32x96xf32>
    %54 = vector.shape_cast %53 : vector<1x32x96xf32> to vector<32x96xf32>
    %c0_42 = arith.constant 0 : index
    %c0_43 = arith.constant 0 : index
    %c0_44 = arith.constant 0 : index
    %55 = vector.load %arg13[%c0_42, %c0_43, %c0_44] : memref<2x1x96xf32, #tpu.memory_space<vmem>>, vector<1x1x96xf32>
    %56 = vector.shape_cast %55 : vector<1x1x96xf32> to vector<1x96xf32>
    %57 = vector.shape_cast %56 : vector<1x96xf32> to vector<1x96xf32>
    %58 = vector.broadcast %57 : vector<1x96xf32> to vector<8x96xf32>
    %c1_45 = arith.constant 1 : index
    %c0_46 = arith.constant 0 : index
    %c0_47 = arith.constant 0 : index
    %59 = vector.load %arg13[%c1_45, %c0_46, %c0_47] : memref<2x1x96xf32, #tpu.memory_space<vmem>>, vector<1x1x96xf32>
    %60 = vector.shape_cast %59 : vector<1x1x96xf32> to vector<1x96xf32>
    %61 = vector.shape_cast %60 : vector<1x96xf32> to vector<1x96xf32>
    %62 = vector.broadcast %61 : vector<1x96xf32> to vector<8x96xf32>
    %cst_48 = arith.constant 0.000000e+00 : f32
    %63 = vector.broadcast %cst_48 : f32 to vector<8x32xf32>
    %cst_49 = arith.constant 0.000000e+00 : f32
    %64 = vector.broadcast %cst_49 : f32 to vector<8x32xf32>
    %65 = vector.extract_strided_slice %43 {offsets = [0, 0], sizes = [8, 96], strides = [1, 1]} : vector<64x96xf32> to vector<8x96xf32>
    %cst_50 = arith.constant dense<0.000000e+00> : vector<8x96xf32>
    %66 = tpu.matmul %63, %52, %cst_50 {dimension_numbers = #tpu.dot_dimension_numbers<[1], [0], [0], [1], [0, 0, 1, 1], [], []>} : vector<8x32xf32>, vector<32x96xf32>, vector<8x96xf32> -> vector<8x96xf32>
    %67 = arith.addf %66, %58 : vector<8x96xf32>
    %68 = vector.extract_strided_slice %65 {offsets = [0, 0], sizes = [8, 32], strides = [1, 1]} : vector<8x96xf32> to vector<8x32xf32>
    %69 = vector.extract_strided_slice %67 {offsets = [0, 0], sizes = [8, 32], strides = [1, 1]} : vector<8x96xf32> to vector<8x32xf32>
    %70 = arith.addf %68, %69 : vector<8x32xf32>
    %71 = arith.negf %70 : vector<8x32xf32>
    %72 = math.exp %71 : vector<8x32xf32>
    %cst_51 = arith.constant 1.000000e+00 : f32
    %73 = vector.broadcast %cst_51 : f32 to vector<8x32xf32>
    %74 = arith.addf %73, %72 : vector<8x32xf32>
    %75 = arith.divf %73, %74 : vector<8x32xf32>
    %76 = vector.extract_strided_slice %65 {offsets = [0, 32], sizes = [8, 32], strides = [1, 1]} : vector<8x96xf32> to vector<8x32xf32>
    %77 = vector.extract_strided_slice %67 {offsets = [0, 32], sizes = [8, 32], strides = [1, 1]} : vector<8x96xf32> to vector<8x32xf32>
    %78 = arith.addf %76, %77 : vector<8x32xf32>
    %79 = arith.negf %78 : vector<8x32xf32>
    %80 = math.exp %79 : vector<8x32xf32>
    %cst_52 = arith.constant 1.000000e+00 : f32
    %81 = vector.broadcast %cst_52 : f32 to vector<8x32xf32>
    %82 = arith.addf %81, %80 : vector<8x32xf32>
    %83 = arith.divf %81, %82 : vector<8x32xf32>
    %84 = vector.extract_strided_slice %65 {offsets = [0, 64], sizes = [8, 32], strides = [1, 1]} : vector<8x96xf32> to vector<8x32xf32>
    %85 = vector.extract_strided_slice %67 {offsets = [0, 64], sizes = [8, 32], strides = [1, 1]} : vector<8x96xf32> to vector<8x32xf32>
    %86 = arith.mulf %75, %85 : vector<8x32xf32>
    %87 = arith.addf %84, %86 : vector<8x32xf32>
    %88 = math.tanh %87 : vector<8x32xf32>
    %89 = arith.subf %63, %88 : vector<8x32xf32>
    %90 = arith.mulf %83, %89 : vector<8x32xf32>
    %91 = arith.addf %88, %90 : vector<8x32xf32>
    %92 = vector.extract_strided_slice %50 {offsets = [56, 0], sizes = [8, 96], strides = [1, 1]} : vector<64x96xf32> to vector<8x96xf32>
    %cst_53 = arith.constant dense<0.000000e+00> : vector<8x96xf32>
    %93 = tpu.matmul %64, %54, %cst_53 {dimension_numbers = #tpu.dot_dimension_numbers<[1], [0], [0], [1], [0, 0, 1, 1], [], []>} : vector<8x32xf32>, vector<32x96xf32>, vector<8x96xf32> -> vector<8x96xf32>
    %94 = arith.addf %93, %62 : vector<8x96xf32>
    %95 = vector.extract_strided_slice %92 {offsets = [0, 0], sizes = [8, 32], strides = [1, 1]} : vector<8x96xf32> to vector<8x32xf32>
    %96 = vector.extract_strided_slice %94 {offsets = [0, 0], sizes = [8, 32], strides = [1, 1]} : vector<8x96xf32> to vector<8x32xf32>
    %97 = arith.addf %95, %96 : vector<8x32xf32>
    %98 = arith.negf %97 : vector<8x32xf32>
    %99 = math.exp %98 : vector<8x32xf32>
    %cst_54 = arith.constant 1.000000e+00 : f32
    %100 = vector.broadcast %cst_54 : f32 to vector<8x32xf32>
    %101 = arith.addf %100, %99 : vector<8x32xf32>
    %102 = arith.divf %100, %101 : vector<8x32xf32>
    %103 = vector.extract_strided_slice %92 {offsets = [0, 32], sizes = [8, 32], strides = [1, 1]} : vector<8x96xf32> to vector<8x32xf32>
    %104 = vector.extract_strided_slice %94 {offsets = [0, 32], sizes = [8, 32], strides = [1, 1]} : vector<8x96xf32> to vector<8x32xf32>
    %105 = arith.addf %103, %104 : vector<8x32xf32>
    %106 = arith.negf %105 : vector<8x32xf32>
    %107 = math.exp %106 : vector<8x32xf32>
    %cst_55 = arith.constant 1.000000e+00 : f32
    %108 = vector.broadcast %cst_55 : f32 to vector<8x32xf32>
    %109 = arith.addf %108, %107 : vector<8x32xf32>
    %110 = arith.divf %108, %109 : vector<8x32xf32>
    %111 = vector.extract_strided_slice %92 {offsets = [0, 64], sizes = [8, 32], strides = [1, 1]} : vector<8x96xf32> to vector<8x32xf32>
    %112 = vector.extract_strided_slice %94 {offsets = [0, 64], sizes = [8, 32], strides = [1, 1]} : vector<8x96xf32> to vector<8x32xf32>
    %113 = arith.mulf %102, %112 : vector<8x32xf32>
    %114 = arith.addf %111, %113 : vector<8x32xf32>
    %115 = math.tanh %114 : vector<8x32xf32>
    %116 = arith.subf %64, %115 : vector<8x32xf32>
    %117 = arith.mulf %110, %116 : vector<8x32xf32>
    %118 = arith.addf %115, %117 : vector<8x32xf32>
    %119 = vector.extract_strided_slice %43 {offsets = [8, 0], sizes = [8, 96], strides = [1, 1]} : vector<64x96xf32> to vector<8x96xf32>
    %cst_56 = arith.constant dense<0.000000e+00> : vector<8x96xf32>
    %120 = tpu.matmul %91, %52, %cst_56 {dimension_numbers = #tpu.dot_dimension_numbers<[1], [0], [0], [1], [0, 0, 1, 1], [], []>} : vector<8x32xf32>, vector<32x96xf32>, vector<8x96xf32> -> vector<8x96xf32>
    %121 = arith.addf %120, %58 : vector<8x96xf32>
    %122 = vector.extract_strided_slice %119 {offsets = [0, 0], sizes = [8, 32], strides = [1, 1]} : vector<8x96xf32> to vector<8x32xf32>
    %123 = vector.extract_strided_slice %121 {offsets = [0, 0], sizes = [8, 32], strides = [1, 1]} : vector<8x96xf32> to vector<8x32xf32>
    %124 = arith.addf %122, %123 : vector<8x32xf32>
    %125 = arith.negf %124 : vector<8x32xf32>
    %126 = math.exp %125 : vector<8x32xf32>
    %cst_57 = arith.constant 1.000000e+00 : f32
    %127 = vector.broadcast %cst_57 : f32 to vector<8x32xf32>
    %128 = arith.addf %127, %126 : vector<8x32xf32>
    %129 = arith.divf %127, %128 : vector<8x32xf32>
    %130 = vector.extract_strided_slice %119 {offsets = [0, 32], sizes = [8, 32], strides = [1, 1]} : vector<8x96xf32> to vector<8x32xf32>
    %131 = vector.extract_strided_slice %121 {offsets = [0, 32], sizes = [8, 32], strides = [1, 1]} : vector<8x96xf32> to vector<8x32xf32>
    %132 = arith.addf %130, %131 : vector<8x32xf32>
    %133 = arith.negf %132 : vector<8x32xf32>
    %134 = math.exp %133 : vector<8x32xf32>
    %cst_58 = arith.constant 1.000000e+00 : f32
    %135 = vector.broadcast %cst_58 : f32 to vector<8x32xf32>
    %136 = arith.addf %135, %134 : vector<8x32xf32>
    %137 = arith.divf %135, %136 : vector<8x32xf32>
    %138 = vector.extract_strided_slice %119 {offsets = [0, 64], sizes = [8, 32], strides = [1, 1]} : vector<8x96xf32> to vector<8x32xf32>
    %139 = vector.extract_strided_slice %121 {offsets = [0, 64], sizes = [8, 32], strides = [1, 1]} : vector<8x96xf32> to vector<8x32xf32>
    %140 = arith.mulf %129, %139 : vector<8x32xf32>
    %141 = arith.addf %138, %140 : vector<8x32xf32>
    %142 = math.tanh %141 : vector<8x32xf32>
    %143 = arith.subf %91, %142 : vector<8x32xf32>
    %144 = arith.mulf %137, %143 : vector<8x32xf32>
    %145 = arith.addf %142, %144 : vector<8x32xf32>
    %146 = vector.extract_strided_slice %50 {offsets = [48, 0], sizes = [8, 96], strides = [1, 1]} : vector<64x96xf32> to vector<8x96xf32>
    %cst_59 = arith.constant dense<0.000000e+00> : vector<8x96xf32>
    %147 = tpu.matmul %118, %54, %cst_59 {dimension_numbers = #tpu.dot_dimension_numbers<[1], [0], [0], [1], [0, 0, 1, 1], [], []>} : vector<8x32xf32>, vector<32x96xf32>, vector<8x96xf32> -> vector<8x96xf32>
    %148 = arith.addf %147, %62 : vector<8x96xf32>
    %149 = vector.extract_strided_slice %146 {offsets = [0, 0], sizes = [8, 32], strides = [1, 1]} : vector<8x96xf32> to vector<8x32xf32>
    %150 = vector.extract_strided_slice %148 {offsets = [0, 0], sizes = [8, 32], strides = [1, 1]} : vector<8x96xf32> to vector<8x32xf32>
    %151 = arith.addf %149, %150 : vector<8x32xf32>
    %152 = arith.negf %151 : vector<8x32xf32>
    %153 = math.exp %152 : vector<8x32xf32>
    %cst_60 = arith.constant 1.000000e+00 : f32
    %154 = vector.broadcast %cst_60 : f32 to vector<8x32xf32>
    %155 = arith.addf %154, %153 : vector<8x32xf32>
    %156 = arith.divf %154, %155 : vector<8x32xf32>
    %157 = vector.extract_strided_slice %146 {offsets = [0, 32], sizes = [8, 32], strides = [1, 1]} : vector<8x96xf32> to vector<8x32xf32>
    %158 = vector.extract_strided_slice %148 {offsets = [0, 32], sizes = [8, 32], strides = [1, 1]} : vector<8x96xf32> to vector<8x32xf32>
    %159 = arith.addf %157, %158 : vector<8x32xf32>
    %160 = arith.negf %159 : vector<8x32xf32>
    %161 = math.exp %160 : vector<8x32xf32>
    %cst_61 = arith.constant 1.000000e+00 : f32
    %162 = vector.broadcast %cst_61 : f32 to vector<8x32xf32>
    %163 = arith.addf %162, %161 : vector<8x32xf32>
    %164 = arith.divf %162, %163 : vector<8x32xf32>
    %165 = vector.extract_strided_slice %146 {offsets = [0, 64], sizes = [8, 32], strides = [1, 1]} : vector<8x96xf32> to vector<8x32xf32>
    %166 = vector.extract_strided_slice %148 {offsets = [0, 64], sizes = [8, 32], strides = [1, 1]} : vector<8x96xf32> to vector<8x32xf32>
    %167 = arith.mulf %156, %166 : vector<8x32xf32>
    %168 = arith.addf %165, %167 : vector<8x32xf32>
    %169 = math.tanh %168 : vector<8x32xf32>
    %170 = arith.subf %118, %169 : vector<8x32xf32>
    %171 = arith.mulf %164, %170 : vector<8x32xf32>
    %172 = arith.addf %169, %171 : vector<8x32xf32>
    %173 = vector.extract_strided_slice %43 {offsets = [16, 0], sizes = [8, 96], strides = [1, 1]} : vector<64x96xf32> to vector<8x96xf32>
    %cst_62 = arith.constant dense<0.000000e+00> : vector<8x96xf32>
    %174 = tpu.matmul %145, %52, %cst_62 {dimension_numbers = #tpu.dot_dimension_numbers<[1], [0], [0], [1], [0, 0, 1, 1], [], []>} : vector<8x32xf32>, vector<32x96xf32>, vector<8x96xf32> -> vector<8x96xf32>
    %175 = arith.addf %174, %58 : vector<8x96xf32>
    %176 = vector.extract_strided_slice %173 {offsets = [0, 0], sizes = [8, 32], strides = [1, 1]} : vector<8x96xf32> to vector<8x32xf32>
    %177 = vector.extract_strided_slice %175 {offsets = [0, 0], sizes = [8, 32], strides = [1, 1]} : vector<8x96xf32> to vector<8x32xf32>
    %178 = arith.addf %176, %177 : vector<8x32xf32>
    %179 = arith.negf %178 : vector<8x32xf32>
    %180 = math.exp %179 : vector<8x32xf32>
    %cst_63 = arith.constant 1.000000e+00 : f32
    %181 = vector.broadcast %cst_63 : f32 to vector<8x32xf32>
    %182 = arith.addf %181, %180 : vector<8x32xf32>
    %183 = arith.divf %181, %182 : vector<8x32xf32>
    %184 = vector.extract_strided_slice %173 {offsets = [0, 32], sizes = [8, 32], strides = [1, 1]} : vector<8x96xf32> to vector<8x32xf32>
    %185 = vector.extract_strided_slice %175 {offsets = [0, 32], sizes = [8, 32], strides = [1, 1]} : vector<8x96xf32> to vector<8x32xf32>
    %186 = arith.addf %184, %185 : vector<8x32xf32>
    %187 = arith.negf %186 : vector<8x32xf32>
    %188 = math.exp %187 : vector<8x32xf32>
    %cst_64 = arith.constant 1.000000e+00 : f32
    %189 = vector.broadcast %cst_64 : f32 to vector<8x32xf32>
    %190 = arith.addf %189, %188 : vector<8x32xf32>
    %191 = arith.divf %189, %190 : vector<8x32xf32>
    %192 = vector.extract_strided_slice %173 {offsets = [0, 64], sizes = [8, 32], strides = [1, 1]} : vector<8x96xf32> to vector<8x32xf32>
    %193 = vector.extract_strided_slice %175 {offsets = [0, 64], sizes = [8, 32], strides = [1, 1]} : vector<8x96xf32> to vector<8x32xf32>
    %194 = arith.mulf %183, %193 : vector<8x32xf32>
    %195 = arith.addf %192, %194 : vector<8x32xf32>
    %196 = math.tanh %195 : vector<8x32xf32>
    %197 = arith.subf %145, %196 : vector<8x32xf32>
    %198 = arith.mulf %191, %197 : vector<8x32xf32>
    %199 = arith.addf %196, %198 : vector<8x32xf32>
    %200 = vector.extract_strided_slice %50 {offsets = [40, 0], sizes = [8, 96], strides = [1, 1]} : vector<64x96xf32> to vector<8x96xf32>
    %cst_65 = arith.constant dense<0.000000e+00> : vector<8x96xf32>
    %201 = tpu.matmul %172, %54, %cst_65 {dimension_numbers = #tpu.dot_dimension_numbers<[1], [0], [0], [1], [0, 0, 1, 1], [], []>} : vector<8x32xf32>, vector<32x96xf32>, vector<8x96xf32> -> vector<8x96xf32>
    %202 = arith.addf %201, %62 : vector<8x96xf32>
    %203 = vector.extract_strided_slice %200 {offsets = [0, 0], sizes = [8, 32], strides = [1, 1]} : vector<8x96xf32> to vector<8x32xf32>
    %204 = vector.extract_strided_slice %202 {offsets = [0, 0], sizes = [8, 32], strides = [1, 1]} : vector<8x96xf32> to vector<8x32xf32>
    %205 = arith.addf %203, %204 : vector<8x32xf32>
    %206 = arith.negf %205 : vector<8x32xf32>
    %207 = math.exp %206 : vector<8x32xf32>
    %cst_66 = arith.constant 1.000000e+00 : f32
    %208 = vector.broadcast %cst_66 : f32 to vector<8x32xf32>
    %209 = arith.addf %208, %207 : vector<8x32xf32>
    %210 = arith.divf %208, %209 : vector<8x32xf32>
    %211 = vector.extract_strided_slice %200 {offsets = [0, 32], sizes = [8, 32], strides = [1, 1]} : vector<8x96xf32> to vector<8x32xf32>
    %212 = vector.extract_strided_slice %202 {offsets = [0, 32], sizes = [8, 32], strides = [1, 1]} : vector<8x96xf32> to vector<8x32xf32>
    %213 = arith.addf %211, %212 : vector<8x32xf32>
    %214 = arith.negf %213 : vector<8x32xf32>
    %215 = math.exp %214 : vector<8x32xf32>
    %cst_67 = arith.constant 1.000000e+00 : f32
    %216 = vector.broadcast %cst_67 : f32 to vector<8x32xf32>
    %217 = arith.addf %216, %215 : vector<8x32xf32>
    %218 = arith.divf %216, %217 : vector<8x32xf32>
    %219 = vector.extract_strided_slice %200 {offsets = [0, 64], sizes = [8, 32], strides = [1, 1]} : vector<8x96xf32> to vector<8x32xf32>
    %220 = vector.extract_strided_slice %202 {offsets = [0, 64], sizes = [8, 32], strides = [1, 1]} : vector<8x96xf32> to vector<8x32xf32>
    %221 = arith.mulf %210, %220 : vector<8x32xf32>
    %222 = arith.addf %219, %221 : vector<8x32xf32>
    %223 = math.tanh %222 : vector<8x32xf32>
    %224 = arith.subf %172, %223 : vector<8x32xf32>
    %225 = arith.mulf %218, %224 : vector<8x32xf32>
    %226 = arith.addf %223, %225 : vector<8x32xf32>
    %227 = vector.extract_strided_slice %43 {offsets = [24, 0], sizes = [8, 96], strides = [1, 1]} : vector<64x96xf32> to vector<8x96xf32>
    %cst_68 = arith.constant dense<0.000000e+00> : vector<8x96xf32>
    %228 = tpu.matmul %199, %52, %cst_68 {dimension_numbers = #tpu.dot_dimension_numbers<[1], [0], [0], [1], [0, 0, 1, 1], [], []>} : vector<8x32xf32>, vector<32x96xf32>, vector<8x96xf32> -> vector<8x96xf32>
    %229 = arith.addf %228, %58 : vector<8x96xf32>
    %230 = vector.extract_strided_slice %227 {offsets = [0, 0], sizes = [8, 32], strides = [1, 1]} : vector<8x96xf32> to vector<8x32xf32>
    %231 = vector.extract_strided_slice %229 {offsets = [0, 0], sizes = [8, 32], strides = [1, 1]} : vector<8x96xf32> to vector<8x32xf32>
    %232 = arith.addf %230, %231 : vector<8x32xf32>
    %233 = arith.negf %232 : vector<8x32xf32>
    %234 = math.exp %233 : vector<8x32xf32>
    %cst_69 = arith.constant 1.000000e+00 : f32
    %235 = vector.broadcast %cst_69 : f32 to vector<8x32xf32>
    %236 = arith.addf %235, %234 : vector<8x32xf32>
    %237 = arith.divf %235, %236 : vector<8x32xf32>
    %238 = vector.extract_strided_slice %227 {offsets = [0, 32], sizes = [8, 32], strides = [1, 1]} : vector<8x96xf32> to vector<8x32xf32>
    %239 = vector.extract_strided_slice %229 {offsets = [0, 32], sizes = [8, 32], strides = [1, 1]} : vector<8x96xf32> to vector<8x32xf32>
    %240 = arith.addf %238, %239 : vector<8x32xf32>
    %241 = arith.negf %240 : vector<8x32xf32>
    %242 = math.exp %241 : vector<8x32xf32>
    %cst_70 = arith.constant 1.000000e+00 : f32
    %243 = vector.broadcast %cst_70 : f32 to vector<8x32xf32>
    %244 = arith.addf %243, %242 : vector<8x32xf32>
    %245 = arith.divf %243, %244 : vector<8x32xf32>
    %246 = vector.extract_strided_slice %227 {offsets = [0, 64], sizes = [8, 32], strides = [1, 1]} : vector<8x96xf32> to vector<8x32xf32>
    %247 = vector.extract_strided_slice %229 {offsets = [0, 64], sizes = [8, 32], strides = [1, 1]} : vector<8x96xf32> to vector<8x32xf32>
    %248 = arith.mulf %237, %247 : vector<8x32xf32>
    %249 = arith.addf %246, %248 : vector<8x32xf32>
    %250 = math.tanh %249 : vector<8x32xf32>
    %251 = arith.subf %199, %250 : vector<8x32xf32>
    %252 = arith.mulf %245, %251 : vector<8x32xf32>
    %253 = arith.addf %250, %252 : vector<8x32xf32>
    %254 = vector.extract_strided_slice %50 {offsets = [32, 0], sizes = [8, 96], strides = [1, 1]} : vector<64x96xf32> to vector<8x96xf32>
    %cst_71 = arith.constant dense<0.000000e+00> : vector<8x96xf32>
    %255 = tpu.matmul %226, %54, %cst_71 {dimension_numbers = #tpu.dot_dimension_numbers<[1], [0], [0], [1], [0, 0, 1, 1], [], []>} : vector<8x32xf32>, vector<32x96xf32>, vector<8x96xf32> -> vector<8x96xf32>
    %256 = arith.addf %255, %62 : vector<8x96xf32>
    %257 = vector.extract_strided_slice %254 {offsets = [0, 0], sizes = [8, 32], strides = [1, 1]} : vector<8x96xf32> to vector<8x32xf32>
    %258 = vector.extract_strided_slice %256 {offsets = [0, 0], sizes = [8, 32], strides = [1, 1]} : vector<8x96xf32> to vector<8x32xf32>
    %259 = arith.addf %257, %258 : vector<8x32xf32>
    %260 = arith.negf %259 : vector<8x32xf32>
    %261 = math.exp %260 : vector<8x32xf32>
    %cst_72 = arith.constant 1.000000e+00 : f32
    %262 = vector.broadcast %cst_72 : f32 to vector<8x32xf32>
    %263 = arith.addf %262, %261 : vector<8x32xf32>
    %264 = arith.divf %262, %263 : vector<8x32xf32>
    %265 = vector.extract_strided_slice %254 {offsets = [0, 32], sizes = [8, 32], strides = [1, 1]} : vector<8x96xf32> to vector<8x32xf32>
    %266 = vector.extract_strided_slice %256 {offsets = [0, 32], sizes = [8, 32], strides = [1, 1]} : vector<8x96xf32> to vector<8x32xf32>
    %267 = arith.addf %265, %266 : vector<8x32xf32>
    %268 = arith.negf %267 : vector<8x32xf32>
    %269 = math.exp %268 : vector<8x32xf32>
    %cst_73 = arith.constant 1.000000e+00 : f32
    %270 = vector.broadcast %cst_73 : f32 to vector<8x32xf32>
    %271 = arith.addf %270, %269 : vector<8x32xf32>
    %272 = arith.divf %270, %271 : vector<8x32xf32>
    %273 = vector.extract_strided_slice %254 {offsets = [0, 64], sizes = [8, 32], strides = [1, 1]} : vector<8x96xf32> to vector<8x32xf32>
    %274 = vector.extract_strided_slice %256 {offsets = [0, 64], sizes = [8, 32], strides = [1, 1]} : vector<8x96xf32> to vector<8x32xf32>
    %275 = arith.mulf %264, %274 : vector<8x32xf32>
    %276 = arith.addf %273, %275 : vector<8x32xf32>
    %277 = math.tanh %276 : vector<8x32xf32>
    %278 = arith.subf %226, %277 : vector<8x32xf32>
    %279 = arith.mulf %272, %278 : vector<8x32xf32>
    %280 = arith.addf %277, %279 : vector<8x32xf32>
    %281 = vector.extract_strided_slice %43 {offsets = [32, 0], sizes = [8, 96], strides = [1, 1]} : vector<64x96xf32> to vector<8x96xf32>
    %cst_74 = arith.constant dense<0.000000e+00> : vector<8x96xf32>
    %282 = tpu.matmul %253, %52, %cst_74 {dimension_numbers = #tpu.dot_dimension_numbers<[1], [0], [0], [1], [0, 0, 1, 1], [], []>} : vector<8x32xf32>, vector<32x96xf32>, vector<8x96xf32> -> vector<8x96xf32>
    %283 = arith.addf %282, %58 : vector<8x96xf32>
    %284 = vector.extract_strided_slice %281 {offsets = [0, 0], sizes = [8, 32], strides = [1, 1]} : vector<8x96xf32> to vector<8x32xf32>
    %285 = vector.extract_strided_slice %283 {offsets = [0, 0], sizes = [8, 32], strides = [1, 1]} : vector<8x96xf32> to vector<8x32xf32>
    %286 = arith.addf %284, %285 : vector<8x32xf32>
    %287 = arith.negf %286 : vector<8x32xf32>
    %288 = math.exp %287 : vector<8x32xf32>
    %cst_75 = arith.constant 1.000000e+00 : f32
    %289 = vector.broadcast %cst_75 : f32 to vector<8x32xf32>
    %290 = arith.addf %289, %288 : vector<8x32xf32>
    %291 = arith.divf %289, %290 : vector<8x32xf32>
    %292 = vector.extract_strided_slice %281 {offsets = [0, 32], sizes = [8, 32], strides = [1, 1]} : vector<8x96xf32> to vector<8x32xf32>
    %293 = vector.extract_strided_slice %283 {offsets = [0, 32], sizes = [8, 32], strides = [1, 1]} : vector<8x96xf32> to vector<8x32xf32>
    %294 = arith.addf %292, %293 : vector<8x32xf32>
    %295 = arith.negf %294 : vector<8x32xf32>
    %296 = math.exp %295 : vector<8x32xf32>
    %cst_76 = arith.constant 1.000000e+00 : f32
    %297 = vector.broadcast %cst_76 : f32 to vector<8x32xf32>
    %298 = arith.addf %297, %296 : vector<8x32xf32>
    %299 = arith.divf %297, %298 : vector<8x32xf32>
    %300 = vector.extract_strided_slice %281 {offsets = [0, 64], sizes = [8, 32], strides = [1, 1]} : vector<8x96xf32> to vector<8x32xf32>
    %301 = vector.extract_strided_slice %283 {offsets = [0, 64], sizes = [8, 32], strides = [1, 1]} : vector<8x96xf32> to vector<8x32xf32>
    %302 = arith.mulf %291, %301 : vector<8x32xf32>
    %303 = arith.addf %300, %302 : vector<8x32xf32>
    %304 = math.tanh %303 : vector<8x32xf32>
    %305 = arith.subf %253, %304 : vector<8x32xf32>
    %306 = arith.mulf %299, %305 : vector<8x32xf32>
    %307 = arith.addf %304, %306 : vector<8x32xf32>
    %308 = vector.extract_strided_slice %50 {offsets = [24, 0], sizes = [8, 96], strides = [1, 1]} : vector<64x96xf32> to vector<8x96xf32>
    %cst_77 = arith.constant dense<0.000000e+00> : vector<8x96xf32>
    %309 = tpu.matmul %280, %54, %cst_77 {dimension_numbers = #tpu.dot_dimension_numbers<[1], [0], [0], [1], [0, 0, 1, 1], [], []>} : vector<8x32xf32>, vector<32x96xf32>, vector<8x96xf32> -> vector<8x96xf32>
    %310 = arith.addf %309, %62 : vector<8x96xf32>
    %311 = vector.extract_strided_slice %308 {offsets = [0, 0], sizes = [8, 32], strides = [1, 1]} : vector<8x96xf32> to vector<8x32xf32>
    %312 = vector.extract_strided_slice %310 {offsets = [0, 0], sizes = [8, 32], strides = [1, 1]} : vector<8x96xf32> to vector<8x32xf32>
    %313 = arith.addf %311, %312 : vector<8x32xf32>
    %314 = arith.negf %313 : vector<8x32xf32>
    %315 = math.exp %314 : vector<8x32xf32>
    %cst_78 = arith.constant 1.000000e+00 : f32
    %316 = vector.broadcast %cst_78 : f32 to vector<8x32xf32>
    %317 = arith.addf %316, %315 : vector<8x32xf32>
    %318 = arith.divf %316, %317 : vector<8x32xf32>
    %319 = vector.extract_strided_slice %308 {offsets = [0, 32], sizes = [8, 32], strides = [1, 1]} : vector<8x96xf32> to vector<8x32xf32>
    %320 = vector.extract_strided_slice %310 {offsets = [0, 32], sizes = [8, 32], strides = [1, 1]} : vector<8x96xf32> to vector<8x32xf32>
    %321 = arith.addf %319, %320 : vector<8x32xf32>
    %322 = arith.negf %321 : vector<8x32xf32>
    %323 = math.exp %322 : vector<8x32xf32>
    %cst_79 = arith.constant 1.000000e+00 : f32
    %324 = vector.broadcast %cst_79 : f32 to vector<8x32xf32>
    %325 = arith.addf %324, %323 : vector<8x32xf32>
    %326 = arith.divf %324, %325 : vector<8x32xf32>
    %327 = vector.extract_strided_slice %308 {offsets = [0, 64], sizes = [8, 32], strides = [1, 1]} : vector<8x96xf32> to vector<8x32xf32>
    %328 = vector.extract_strided_slice %310 {offsets = [0, 64], sizes = [8, 32], strides = [1, 1]} : vector<8x96xf32> to vector<8x32xf32>
    %329 = arith.mulf %318, %328 : vector<8x32xf32>
    %330 = arith.addf %327, %329 : vector<8x32xf32>
    %331 = math.tanh %330 : vector<8x32xf32>
    %332 = arith.subf %280, %331 : vector<8x32xf32>
    %333 = arith.mulf %326, %332 : vector<8x32xf32>
    %334 = arith.addf %331, %333 : vector<8x32xf32>
    %335 = vector.extract_strided_slice %43 {offsets = [40, 0], sizes = [8, 96], strides = [1, 1]} : vector<64x96xf32> to vector<8x96xf32>
    %cst_80 = arith.constant dense<0.000000e+00> : vector<8x96xf32>
    %336 = tpu.matmul %307, %52, %cst_80 {dimension_numbers = #tpu.dot_dimension_numbers<[1], [0], [0], [1], [0, 0, 1, 1], [], []>} : vector<8x32xf32>, vector<32x96xf32>, vector<8x96xf32> -> vector<8x96xf32>
    %337 = arith.addf %336, %58 : vector<8x96xf32>
    %338 = vector.extract_strided_slice %335 {offsets = [0, 0], sizes = [8, 32], strides = [1, 1]} : vector<8x96xf32> to vector<8x32xf32>
    %339 = vector.extract_strided_slice %337 {offsets = [0, 0], sizes = [8, 32], strides = [1, 1]} : vector<8x96xf32> to vector<8x32xf32>
    %340 = arith.addf %338, %339 : vector<8x32xf32>
    %341 = arith.negf %340 : vector<8x32xf32>
    %342 = math.exp %341 : vector<8x32xf32>
    %cst_81 = arith.constant 1.000000e+00 : f32
    %343 = vector.broadcast %cst_81 : f32 to vector<8x32xf32>
    %344 = arith.addf %343, %342 : vector<8x32xf32>
    %345 = arith.divf %343, %344 : vector<8x32xf32>
    %346 = vector.extract_strided_slice %335 {offsets = [0, 32], sizes = [8, 32], strides = [1, 1]} : vector<8x96xf32> to vector<8x32xf32>
    %347 = vector.extract_strided_slice %337 {offsets = [0, 32], sizes = [8, 32], strides = [1, 1]} : vector<8x96xf32> to vector<8x32xf32>
    %348 = arith.addf %346, %347 : vector<8x32xf32>
    %349 = arith.negf %348 : vector<8x32xf32>
    %350 = math.exp %349 : vector<8x32xf32>
    %cst_82 = arith.constant 1.000000e+00 : f32
    %351 = vector.broadcast %cst_82 : f32 to vector<8x32xf32>
    %352 = arith.addf %351, %350 : vector<8x32xf32>
    %353 = arith.divf %351, %352 : vector<8x32xf32>
    %354 = vector.extract_strided_slice %335 {offsets = [0, 64], sizes = [8, 32], strides = [1, 1]} : vector<8x96xf32> to vector<8x32xf32>
    %355 = vector.extract_strided_slice %337 {offsets = [0, 64], sizes = [8, 32], strides = [1, 1]} : vector<8x96xf32> to vector<8x32xf32>
    %356 = arith.mulf %345, %355 : vector<8x32xf32>
    %357 = arith.addf %354, %356 : vector<8x32xf32>
    %358 = math.tanh %357 : vector<8x32xf32>
    %359 = arith.subf %307, %358 : vector<8x32xf32>
    %360 = arith.mulf %353, %359 : vector<8x32xf32>
    %361 = arith.addf %358, %360 : vector<8x32xf32>
    %362 = vector.extract_strided_slice %50 {offsets = [16, 0], sizes = [8, 96], strides = [1, 1]} : vector<64x96xf32> to vector<8x96xf32>
    %cst_83 = arith.constant dense<0.000000e+00> : vector<8x96xf32>
    %363 = tpu.matmul %334, %54, %cst_83 {dimension_numbers = #tpu.dot_dimension_numbers<[1], [0], [0], [1], [0, 0, 1, 1], [], []>} : vector<8x32xf32>, vector<32x96xf32>, vector<8x96xf32> -> vector<8x96xf32>
    %364 = arith.addf %363, %62 : vector<8x96xf32>
    %365 = vector.extract_strided_slice %362 {offsets = [0, 0], sizes = [8, 32], strides = [1, 1]} : vector<8x96xf32> to vector<8x32xf32>
    %366 = vector.extract_strided_slice %364 {offsets = [0, 0], sizes = [8, 32], strides = [1, 1]} : vector<8x96xf32> to vector<8x32xf32>
    %367 = arith.addf %365, %366 : vector<8x32xf32>
    %368 = arith.negf %367 : vector<8x32xf32>
    %369 = math.exp %368 : vector<8x32xf32>
    %cst_84 = arith.constant 1.000000e+00 : f32
    %370 = vector.broadcast %cst_84 : f32 to vector<8x32xf32>
    %371 = arith.addf %370, %369 : vector<8x32xf32>
    %372 = arith.divf %370, %371 : vector<8x32xf32>
    %373 = vector.extract_strided_slice %362 {offsets = [0, 32], sizes = [8, 32], strides = [1, 1]} : vector<8x96xf32> to vector<8x32xf32>
    %374 = vector.extract_strided_slice %364 {offsets = [0, 32], sizes = [8, 32], strides = [1, 1]} : vector<8x96xf32> to vector<8x32xf32>
    %375 = arith.addf %373, %374 : vector<8x32xf32>
    %376 = arith.negf %375 : vector<8x32xf32>
    %377 = math.exp %376 : vector<8x32xf32>
    %cst_85 = arith.constant 1.000000e+00 : f32
    %378 = vector.broadcast %cst_85 : f32 to vector<8x32xf32>
    %379 = arith.addf %378, %377 : vector<8x32xf32>
    %380 = arith.divf %378, %379 : vector<8x32xf32>
    %381 = vector.extract_strided_slice %362 {offsets = [0, 64], sizes = [8, 32], strides = [1, 1]} : vector<8x96xf32> to vector<8x32xf32>
    %382 = vector.extract_strided_slice %364 {offsets = [0, 64], sizes = [8, 32], strides = [1, 1]} : vector<8x96xf32> to vector<8x32xf32>
    %383 = arith.mulf %372, %382 : vector<8x32xf32>
    %384 = arith.addf %381, %383 : vector<8x32xf32>
    %385 = math.tanh %384 : vector<8x32xf32>
    %386 = arith.subf %334, %385 : vector<8x32xf32>
    %387 = arith.mulf %380, %386 : vector<8x32xf32>
    %388 = arith.addf %385, %387 : vector<8x32xf32>
    %389 = vector.extract_strided_slice %43 {offsets = [48, 0], sizes = [8, 96], strides = [1, 1]} : vector<64x96xf32> to vector<8x96xf32>
    %cst_86 = arith.constant dense<0.000000e+00> : vector<8x96xf32>
    %390 = tpu.matmul %361, %52, %cst_86 {dimension_numbers = #tpu.dot_dimension_numbers<[1], [0], [0], [1], [0, 0, 1, 1], [], []>} : vector<8x32xf32>, vector<32x96xf32>, vector<8x96xf32> -> vector<8x96xf32>
    %391 = arith.addf %390, %58 : vector<8x96xf32>
    %392 = vector.extract_strided_slice %389 {offsets = [0, 0], sizes = [8, 32], strides = [1, 1]} : vector<8x96xf32> to vector<8x32xf32>
    %393 = vector.extract_strided_slice %391 {offsets = [0, 0], sizes = [8, 32], strides = [1, 1]} : vector<8x96xf32> to vector<8x32xf32>
    %394 = arith.addf %392, %393 : vector<8x32xf32>
    %395 = arith.negf %394 : vector<8x32xf32>
    %396 = math.exp %395 : vector<8x32xf32>
    %cst_87 = arith.constant 1.000000e+00 : f32
    %397 = vector.broadcast %cst_87 : f32 to vector<8x32xf32>
    %398 = arith.addf %397, %396 : vector<8x32xf32>
    %399 = arith.divf %397, %398 : vector<8x32xf32>
    %400 = vector.extract_strided_slice %389 {offsets = [0, 32], sizes = [8, 32], strides = [1, 1]} : vector<8x96xf32> to vector<8x32xf32>
    %401 = vector.extract_strided_slice %391 {offsets = [0, 32], sizes = [8, 32], strides = [1, 1]} : vector<8x96xf32> to vector<8x32xf32>
    %402 = arith.addf %400, %401 : vector<8x32xf32>
    %403 = arith.negf %402 : vector<8x32xf32>
    %404 = math.exp %403 : vector<8x32xf32>
    %cst_88 = arith.constant 1.000000e+00 : f32
    %405 = vector.broadcast %cst_88 : f32 to vector<8x32xf32>
    %406 = arith.addf %405, %404 : vector<8x32xf32>
    %407 = arith.divf %405, %406 : vector<8x32xf32>
    %408 = vector.extract_strided_slice %389 {offsets = [0, 64], sizes = [8, 32], strides = [1, 1]} : vector<8x96xf32> to vector<8x32xf32>
    %409 = vector.extract_strided_slice %391 {offsets = [0, 64], sizes = [8, 32], strides = [1, 1]} : vector<8x96xf32> to vector<8x32xf32>
    %410 = arith.mulf %399, %409 : vector<8x32xf32>
    %411 = arith.addf %408, %410 : vector<8x32xf32>
    %412 = math.tanh %411 : vector<8x32xf32>
    %413 = arith.subf %361, %412 : vector<8x32xf32>
    %414 = arith.mulf %407, %413 : vector<8x32xf32>
    %415 = arith.addf %412, %414 : vector<8x32xf32>
    %416 = vector.extract_strided_slice %50 {offsets = [8, 0], sizes = [8, 96], strides = [1, 1]} : vector<64x96xf32> to vector<8x96xf32>
    %cst_89 = arith.constant dense<0.000000e+00> : vector<8x96xf32>
    %417 = tpu.matmul %388, %54, %cst_89 {dimension_numbers = #tpu.dot_dimension_numbers<[1], [0], [0], [1], [0, 0, 1, 1], [], []>} : vector<8x32xf32>, vector<32x96xf32>, vector<8x96xf32> -> vector<8x96xf32>
    %418 = arith.addf %417, %62 : vector<8x96xf32>
    %419 = vector.extract_strided_slice %416 {offsets = [0, 0], sizes = [8, 32], strides = [1, 1]} : vector<8x96xf32> to vector<8x32xf32>
    %420 = vector.extract_strided_slice %418 {offsets = [0, 0], sizes = [8, 32], strides = [1, 1]} : vector<8x96xf32> to vector<8x32xf32>
    %421 = arith.addf %419, %420 : vector<8x32xf32>
    %422 = arith.negf %421 : vector<8x32xf32>
    %423 = math.exp %422 : vector<8x32xf32>
    %cst_90 = arith.constant 1.000000e+00 : f32
    %424 = vector.broadcast %cst_90 : f32 to vector<8x32xf32>
    %425 = arith.addf %424, %423 : vector<8x32xf32>
    %426 = arith.divf %424, %425 : vector<8x32xf32>
    %427 = vector.extract_strided_slice %416 {offsets = [0, 32], sizes = [8, 32], strides = [1, 1]} : vector<8x96xf32> to vector<8x32xf32>
    %428 = vector.extract_strided_slice %418 {offsets = [0, 32], sizes = [8, 32], strides = [1, 1]} : vector<8x96xf32> to vector<8x32xf32>
    %429 = arith.addf %427, %428 : vector<8x32xf32>
    %430 = arith.negf %429 : vector<8x32xf32>
    %431 = math.exp %430 : vector<8x32xf32>
    %cst_91 = arith.constant 1.000000e+00 : f32
    %432 = vector.broadcast %cst_91 : f32 to vector<8x32xf32>
    %433 = arith.addf %432, %431 : vector<8x32xf32>
    %434 = arith.divf %432, %433 : vector<8x32xf32>
    %435 = vector.extract_strided_slice %416 {offsets = [0, 64], sizes = [8, 32], strides = [1, 1]} : vector<8x96xf32> to vector<8x32xf32>
    %436 = vector.extract_strided_slice %418 {offsets = [0, 64], sizes = [8, 32], strides = [1, 1]} : vector<8x96xf32> to vector<8x32xf32>
    %437 = arith.mulf %426, %436 : vector<8x32xf32>
    %438 = arith.addf %435, %437 : vector<8x32xf32>
    %439 = math.tanh %438 : vector<8x32xf32>
    %440 = arith.subf %388, %439 : vector<8x32xf32>
    %441 = arith.mulf %434, %440 : vector<8x32xf32>
    %442 = arith.addf %439, %441 : vector<8x32xf32>
    %443 = vector.extract_strided_slice %43 {offsets = [56, 0], sizes = [8, 96], strides = [1, 1]} : vector<64x96xf32> to vector<8x96xf32>
    %cst_92 = arith.constant dense<0.000000e+00> : vector<8x96xf32>
    %444 = tpu.matmul %415, %52, %cst_92 {dimension_numbers = #tpu.dot_dimension_numbers<[1], [0], [0], [1], [0, 0, 1, 1], [], []>} : vector<8x32xf32>, vector<32x96xf32>, vector<8x96xf32> -> vector<8x96xf32>
    %445 = arith.addf %444, %58 : vector<8x96xf32>
    %446 = vector.extract_strided_slice %443 {offsets = [0, 0], sizes = [8, 32], strides = [1, 1]} : vector<8x96xf32> to vector<8x32xf32>
    %447 = vector.extract_strided_slice %445 {offsets = [0, 0], sizes = [8, 32], strides = [1, 1]} : vector<8x96xf32> to vector<8x32xf32>
    %448 = arith.addf %446, %447 : vector<8x32xf32>
    %449 = arith.negf %448 : vector<8x32xf32>
    %450 = math.exp %449 : vector<8x32xf32>
    %cst_93 = arith.constant 1.000000e+00 : f32
    %451 = vector.broadcast %cst_93 : f32 to vector<8x32xf32>
    %452 = arith.addf %451, %450 : vector<8x32xf32>
    %453 = arith.divf %451, %452 : vector<8x32xf32>
    %454 = vector.extract_strided_slice %443 {offsets = [0, 32], sizes = [8, 32], strides = [1, 1]} : vector<8x96xf32> to vector<8x32xf32>
    %455 = vector.extract_strided_slice %445 {offsets = [0, 32], sizes = [8, 32], strides = [1, 1]} : vector<8x96xf32> to vector<8x32xf32>
    %456 = arith.addf %454, %455 : vector<8x32xf32>
    %457 = arith.negf %456 : vector<8x32xf32>
    %458 = math.exp %457 : vector<8x32xf32>
    %cst_94 = arith.constant 1.000000e+00 : f32
    %459 = vector.broadcast %cst_94 : f32 to vector<8x32xf32>
    %460 = arith.addf %459, %458 : vector<8x32xf32>
    %461 = arith.divf %459, %460 : vector<8x32xf32>
    %462 = vector.extract_strided_slice %443 {offsets = [0, 64], sizes = [8, 32], strides = [1, 1]} : vector<8x96xf32> to vector<8x32xf32>
    %463 = vector.extract_strided_slice %445 {offsets = [0, 64], sizes = [8, 32], strides = [1, 1]} : vector<8x96xf32> to vector<8x32xf32>
    %464 = arith.mulf %453, %463 : vector<8x32xf32>
    %465 = arith.addf %462, %464 : vector<8x32xf32>
    %466 = math.tanh %465 : vector<8x32xf32>
    %467 = arith.subf %415, %466 : vector<8x32xf32>
    %468 = arith.mulf %461, %467 : vector<8x32xf32>
    %469 = arith.addf %466, %468 : vector<8x32xf32>
    %470 = vector.extract_strided_slice %50 {offsets = [0, 0], sizes = [8, 96], strides = [1, 1]} : vector<64x96xf32> to vector<8x96xf32>
    %cst_95 = arith.constant dense<0.000000e+00> : vector<8x96xf32>
    %471 = tpu.matmul %442, %54, %cst_95 {dimension_numbers = #tpu.dot_dimension_numbers<[1], [0], [0], [1], [0, 0, 1, 1], [], []>} : vector<8x32xf32>, vector<32x96xf32>, vector<8x96xf32> -> vector<8x96xf32>
    %472 = arith.addf %471, %62 : vector<8x96xf32>
    %473 = vector.extract_strided_slice %470 {offsets = [0, 0], sizes = [8, 32], strides = [1, 1]} : vector<8x96xf32> to vector<8x32xf32>
    %474 = vector.extract_strided_slice %472 {offsets = [0, 0], sizes = [8, 32], strides = [1, 1]} : vector<8x96xf32> to vector<8x32xf32>
    %475 = arith.addf %473, %474 : vector<8x32xf32>
    %476 = arith.negf %475 : vector<8x32xf32>
    %477 = math.exp %476 : vector<8x32xf32>
    %cst_96 = arith.constant 1.000000e+00 : f32
    %478 = vector.broadcast %cst_96 : f32 to vector<8x32xf32>
    %479 = arith.addf %478, %477 : vector<8x32xf32>
    %480 = arith.divf %478, %479 : vector<8x32xf32>
    %481 = vector.extract_strided_slice %470 {offsets = [0, 32], sizes = [8, 32], strides = [1, 1]} : vector<8x96xf32> to vector<8x32xf32>
    %482 = vector.extract_strided_slice %472 {offsets = [0, 32], sizes = [8, 32], strides = [1, 1]} : vector<8x96xf32> to vector<8x32xf32>
    %483 = arith.addf %481, %482 : vector<8x32xf32>
    %484 = arith.negf %483 : vector<8x32xf32>
    %485 = math.exp %484 : vector<8x32xf32>
    %cst_97 = arith.constant 1.000000e+00 : f32
    %486 = vector.broadcast %cst_97 : f32 to vector<8x32xf32>
    %487 = arith.addf %486, %485 : vector<8x32xf32>
    %488 = arith.divf %486, %487 : vector<8x32xf32>
    %489 = vector.extract_strided_slice %470 {offsets = [0, 64], sizes = [8, 32], strides = [1, 1]} : vector<8x96xf32> to vector<8x32xf32>
    %490 = vector.extract_strided_slice %472 {offsets = [0, 64], sizes = [8, 32], strides = [1, 1]} : vector<8x96xf32> to vector<8x32xf32>
    %491 = arith.mulf %480, %490 : vector<8x32xf32>
    %492 = arith.addf %489, %491 : vector<8x32xf32>
    %493 = math.tanh %492 : vector<8x32xf32>
    %494 = arith.subf %442, %493 : vector<8x32xf32>
    %495 = arith.mulf %488, %494 : vector<8x32xf32>
    %496 = arith.addf %493, %495 : vector<8x32xf32>
    %c0_98 = arith.constant 0 : index
    %c0_99 = arith.constant 0 : index
    %497 = vector.load %arg14[%c0_98, %c0_99] : memref<64x64xf32, #tpu.memory_space<vmem>>, vector<64x64xf32>
    %cst_100 = arith.constant dense<0.000000e+00> : vector<8x64xf32>
    %498 = tpu.matmul %28, %497, %cst_100 {dimension_numbers = #tpu.dot_dimension_numbers<[1], [0], [0], [1], [0, 0, 1, 1], [], []>} : vector<8x64xf32>, vector<64x64xf32>, vector<8x64xf32> -> vector<8x64xf32>
    %c0_101 = arith.constant 0 : index
    %c0_102 = arith.constant 0 : index
    %499 = vector.load %arg15[%c0_101, %c0_102] : memref<32x64xf32, #tpu.memory_space<vmem>>, vector<32x64xf32>
    %cst_103 = arith.constant dense<0.000000e+00> : vector<8x64xf32>
    %500 = tpu.matmul %469, %499, %cst_103 {dimension_numbers = #tpu.dot_dimension_numbers<[1], [0], [0], [1], [0, 0, 1, 1], [], []>} : vector<8x32xf32>, vector<32x64xf32>, vector<8x64xf32> -> vector<8x64xf32>
    %501 = arith.addf %498, %500 : vector<8x64xf32>
    %c0_104 = arith.constant 0 : index
    %c0_105 = arith.constant 0 : index
    %502 = vector.load %arg16[%c0_104, %c0_105] : memref<32x64xf32, #tpu.memory_space<vmem>>, vector<32x64xf32>
    %cst_106 = arith.constant dense<0.000000e+00> : vector<8x64xf32>
    %503 = tpu.matmul %496, %502, %cst_106 {dimension_numbers = #tpu.dot_dimension_numbers<[1], [0], [0], [1], [0, 0, 1, 1], [], []>} : vector<8x32xf32>, vector<32x64xf32>, vector<8x64xf32> -> vector<8x64xf32>
    %504 = arith.addf %501, %503 : vector<8x64xf32>
    %c0_107 = arith.constant 0 : index
    %c0_108 = arith.constant 0 : index
    %505 = vector.load %arg2[%c0_107, %c0_108] : memref<8x8xf32, #tpu.memory_space<vmem>>, vector<8x8xf32>
    %c0_109 = arith.constant 0 : index
    %c0_110 = arith.constant 0 : index
    %506 = vector.load %arg17[%c0_109, %c0_110] : memref<8x64xf32, #tpu.memory_space<vmem>>, vector<8x64xf32>
    %cst_111 = arith.constant dense<0.000000e+00> : vector<8x64xf32>
    %507 = tpu.matmul %505, %506, %cst_111 {dimension_numbers = #tpu.dot_dimension_numbers<[1], [0], [0], [1], [0, 0, 1, 1], [], []>} : vector<8x8xf32>, vector<8x64xf32>, vector<8x64xf32> -> vector<8x64xf32>
    %508 = arith.addf %504, %507 : vector<8x64xf32>
    %c0_112 = arith.constant 0 : index
    %c0_113 = arith.constant 0 : index
    %509 = vector.load %arg18[%c0_112, %c0_113] : memref<1x64xf32, #tpu.memory_space<vmem>>, vector<1x64xf32>
    %510 = vector.broadcast %509 : vector<1x64xf32> to vector<8x64xf32>
    %511 = arith.addf %508, %510 : vector<8x64xf32>
    %512 = math.tanh %511 : vector<8x64xf32>
    %c0_114 = arith.constant 0 : index
    %c0_115 = arith.constant 0 : index
    %513 = vector.load %arg19[%c0_114, %c0_115] : memref<64x25xf32, #tpu.memory_space<vmem>>, vector<64x25xf32>
    %cst_116 = arith.constant dense<0.000000e+00> : vector<8x25xf32>
    %514 = tpu.matmul %512, %513, %cst_116 {dimension_numbers = #tpu.dot_dimension_numbers<[1], [0], [0], [1], [0, 0, 1, 1], [], []>} : vector<8x64xf32>, vector<64x25xf32>, vector<8x25xf32> -> vector<8x25xf32>
    %c0_117 = arith.constant 0 : index
    %c0_118 = arith.constant 0 : index
    %515 = vector.load %arg20[%c0_117, %c0_118] : memref<1x25xf32, #tpu.memory_space<vmem>>, vector<1x25xf32>
    %516 = vector.broadcast %515 : vector<1x25xf32> to vector<8x25xf32>
    %517 = arith.addf %514, %516 : vector<8x25xf32>
    %518 = vector.extract_strided_slice %517 {offsets = [0, 0], sizes = [4, 25], strides = [1, 1]} : vector<8x25xf32> to vector<4x25xf32>
    %c0_119 = arith.constant 0 : index
    %c0_120 = arith.constant 0 : index
    %519 = vector.load %arg21[%c0_119, %c0_120] : memref<4x25xf32, #tpu.memory_space<vmem>>, vector<4x25xf32>
    tpu.vector_store %arg21[%c0_119, %c0_120], %518 {strides = array<i32>} : memref<4x25xf32, #tpu.memory_space<vmem>>, vector<4x25xf32>,
    return
  }
}

</mosaic_0001>

<bundles_post_ra>
// kernel: critic_forward.1
= control target key start
LH: loop header
LB: loop body
LE: loop exit
PB: predicated region body
PF: predicated region fallthrough
CT: control target
= control target key end

     0   :  { %v3873_v3 = vmov 0.0   ;;  %v3874_v8 = vmov 0   ;;  %v3875_v14 = vmov 0.0|0.0   ;;  %vm125_vm0 = vcmask 1043456   ;;  %s4748_s3 = inlined_call_operand.vmem [shape: f32[108,144], index: 3, kind: input, shape index: {}]   ;;  %s4749_s1 = inlined_call_operand.vmem [shape: s32[64,1], index: 1, kind: input, shape index: {}]   ;;  %s4750_s5 = inlined_call_operand.vmem [shape: f32[144,128], index: 5, kind: input, shape index: {}]   ;;  %s4751_s0 = inlined_call_operand.vmem [shape: f32[32,108], index: 0, kind: input, shape index: {}]   ;;  %s4752_s9 = inlined_call_operand.vmem [shape: f32[20,8], index: 9, kind: input, shape index: {}]   ;;  %s4753_s7 = inlined_call_operand.vmem [shape: f32[128,64], index: 7, kind: input, shape index: {}]   ;;  %s4754_s4 = inlined_call_operand.vmem [shape: f32[1,144], index: 4, kind: input, shape index: {}]   ;;  %s4755_s10 = inlined_call_operand.vmem [shape: f32[2,8,96], index: 10, kind: input, shape index: {}]   ;;  %s4756_s6 = inlined_call_operand.vmem [shape: f32[1,128], index: 6, kind: input, shape index: {}]   ;;  %s4757_s12 = inlined_call_operand.vmem [shape: f32[2,32,96], index: 12, kind: input, shape index: {}]   ;;  %s4758_s11 = inlined_call_operand.vmem [shape: f32[2,1,96], index: 11, kind: input, shape index: {}]   ;;  %s4759_s13 = inlined_call_operand.vmem [shape: f32[2,1,96], index: 13, kind: input, shape index: {}]   ;;  %s4760_s14 = inlined_call_operand.vmem [shape: f32[64,64], index: 14, kind: input, shape index: {}]   ;;  %s4761_s8 = inlined_call_operand.vmem [shape: f32[1,64], index: 8, kind: input, shape index: {}]   ;;  %s4762_s15 = inlined_call_operand.vmem [shape: f32[32,64], index: 15, kind: input, shape index: {}]   ;;  %s4763_s16 = inlined_call_operand.vmem [shape: f32[32,64], index: 16, kind: input, shape index: {}]   ;;  %s4764_s17 = inlined_call_operand.vmem [shape: f32[8,64], index: 17, kind: input, shape index: {}]   ;;  %s4765_s2 = inlined_call_operand.vmem [shape: f32[8,8], index: 2, kind: input, shape index: {}]   ;;  %s4766_s19 = inlined_call_operand.vmem [shape: f32[64,25], index: 19, kind: input, shape index: {}]   ;;  %s4767_s18 = inlined_call_operand.vmem [shape: f32[1,64], index: 18, kind: input, shape index: {}]   ;;  %s4768_s20 = inlined_call_operand.vmem [shape: f32[1,25], index: 20, kind: input, shape index: {}]   ;;  %s4769_s21 = inlined_call_operand.vmem [shape: f32[4,25], index: 21, kind: output, shape index: {}]  }
   0x1   :  { %4776 = sst [smem:[#allocation2_spill]] %s4748_s3  ;;  %196 = vmatprep.mubr.f32.mxu0 %v3873_v3  ;;  %3773 = vset.pattern.permute.xlu0 %v3874_v8  ;;  %vm3876_vm1 = vmmov 1   ;;  %vm112_vm3 = vcmask 883712   ;;  %vm260_vm5 = vcmask 130048   ;;  %vm490_vm6 = vcmask 162816  }
   0x2   :  { %4777 = sst [smem:[#allocation3_spill]] %s4749_s1  ;;  %s4782_s26 = sld [smem:[#allocation2_spill]]  ;;  %3774 = vset.pattern.permute.xlu1 %v3874_v8  ;;  %3576 = vmatprep.subr.bf16.mxu1 %v3875_v14  ;;  %vm4118_vm2 = vmpackc.low %vm125_vm0, %vm3876_vm1  ;;  %vm3877_vm14 = vmmov 0   ;;  %vm631_vm15 = vcmask 64512   ;;  %vm2645_vm1 = vcmask 523264  }
   0x3   :  { %4778 = sst [smem:[#allocation4_spill]] %s4750_s5  ;;  %s4783_s22 = sld [smem:[#allocation3_spill]] }
   0x4   :  { %4779 = sst [smem:[#allocation5_spill]] %s4751_s0 }
   0x5   :  { %4780 = sst [smem:[#allocation6_spill]] %s4752_s9  ;;  %s4787_s24 = sld [smem:[#allocation5_spill]] }
   0x6   :  { %4781 = sst [smem:[#allocation7_spill]] %s4753_s7  ;;  %s4784_s7 = sld [smem:[#allocation4_spill]] }
   0x7   :  { %s4789_s29 = sld [smem:[#allocation7_spill]] }
   0x8   :  { %v73_v0 = vld [vmem:[%s4782_s26 + $0x8] sm:$0xff]  ;;  %v75_v1 = vld [vmem:[%s4782_s26 + $0x18] sm:$0xff]  ;;  %v72_v2 = vld [vmem:[%s4782_s26] sm:$0xff] }
   0x9   :  { %v3546_v4 = vpack.c.bf16 %v75_v1, %v73_v0  ;;  %v74_v5 = vld [vmem:[%s4782_s26 + $0x10] sm:$0xff]  ;;  %v77_v6 = vld [vmem:[%s4782_s26 + $0x28] sm:$0xff]  ;;  %v79_v7 = vld [vmem:[%s4782_s26 + $0x38] sm:$0xff] }
   0xa   :  { %v3548_v9 = vpack.c.bf16 %v74_v5, %v72_v2  ;;  %v3550_v10 = vpack.c.bf16 %v79_v7, %v77_v6  ;;  %v76_v11 = vld [vmem:[%s4782_s26 + $0x20] sm:$0xff]  ;;  %v78_v12 = vld [vmem:[%s4782_s26 + $0x30] sm:$0xff]  ;;  %v81_v13 = vld [vmem:[%s4782_s26 + $0x48] sm:$0xff] }
   0xb   :  { %3547 = vmatprep.subr.bf16.mxu0 %v3546_v4  ;;  %v83_v15 = vld [vmem:[%s4782_s26 + $0x58] sm:$0xff]  ;;  %v3552_v16 = vpack.c.bf16 %v78_v12, %v76_v11  ;;  %v80_v18 = vld [vmem:[%s4782_s26 + $0x40] sm:$0xff]  ;;  %v82_v19 = vld [vmem:[%s4782_s26 + $0x50] sm:$0xff] }
   0xc   :  { %3549 = vmatpush1.bf16.msra.mxu0 %v3548_v9  ;;  %v3554_v17 = vpack.c.bf16 %v83_v15, %v81_v13  ;;  %v85_v20 = vld [vmem:[%s4782_s26 + $0x68] sm:$0xff]  ;;  %v87_v21 = vld [vmem:[%s4782_s26 + $0x78] sm:$0xff]  ;;  %v3556_v22 = vpack.c.bf16 %v82_v19, %v80_v18  ;;  %v84_v24 = vld [vmem:[%s4782_s26 + $0x60] sm:$0xff] }
   0xd   :  { %3551 = vmatprep.subr.bf16.mxu0 %v3550_v10  ;;  %v3558_v23 = vpack.c.bf16 %v87_v21, %v85_v20  ;;  %v86_v25 = vld [vmem:[%s4782_s26 + $0x70] sm:$0xff]  ;;  %v89_v26 = vld [vmem:[%s4782_s26 + $0x88] sm:$0xff]  ;;  %v91_v27 = vld [vmem:[%s4782_s26 + $0x98] sm:$0xff] }
   0xe   :  { %v429_v28 = vld [vmem:[%s4783_s22] sm:$0xff]  ;;  %v431_v29 = vld [vmem:[%s4783_s22 + $0x10] sm:$0xff]  ;;  %v3560_v30 = vpack.c.bf16 %v86_v25, %v84_v24  ;;  %v3562_v33 = vpack.c.bf16 %v91_v27, %v89_v26  ;;  %v93_v34 = vld [vmem:[%s4782_s26 + $0xa8] sm:$0xff] }
   0xf   :  { %v88_v31 = vld [vmem:[%s4782_s26 + $0x80] sm:$0xff]  ;;  %v90_v32 = vld [vmem:[%s4782_s26 + $0x90] sm:$0xff]  ;;  %440 = vperm.xlu0 %3773, %v429_v28   ;;  %446 = vperm.xlu1 %3774, %v431_v29   ;;  %v430_v35 = vld [vmem:[%s4783_s22 + $0x8] sm:$0xff] }
  0x10   :  { %3553 = vmatpush1.bf16.msra.mxu0 %v3552_v16  ;;  %v235_v36 = vld [vmem:[%s4784_s7] sm:$0xff]  ;;  %v95_v37 = vld [vmem:[%s4782_s26 + $0xb8] sm:$0xff]  ;;  %v236_v39 = vld [vmem:[%s4784_s7 + $0x8] sm:$0xff]  ;;  %v3564_v43 = vpack.c.bf16 %v90_v32, %v88_v31 }
  0x11   :  { %3555 = vmatprep.subr.bf16.mxu0 %v3554_v17  ;;  %v432_v38 = vld [vmem:[%s4783_s22 + $0x18] sm:$0xff]  ;;  %v3577_v40 = vpack.c.bf16 %v236_v39, %v235_v36  ;;  %v237_v41 = vld [vmem:[%s4784_s7 + $0x10] sm:$0xff]  ;;  %v3566_v44 = vpack.c.bf16 %v95_v37, %v93_v34  ;;  %v92_v45 = vld [vmem:[%s4782_s26 + $0xa0] sm:$0xff] }
  0x12   :  { %v238_v42 = vld [vmem:[%s4784_s7 + $0x18] sm:$0xff]  ;;  %v94_v46 = vld [vmem:[%s4782_s26 + $0xb0] sm:$0xff]  ;;  %v433_v47 = vld [vmem:[%s4783_s22 + $0x20] sm:$0xff] }
  0x13   :  { %443 = vperm.xlu0 %3773, %v430_v35   ;;  %449 = vperm.xlu1 %3774, %v432_v38   ;;  %v97_v48 = vld [vmem:[%s4782_s26 + $0xc8] sm:$0xff]  ;;  %v99_v49 = vld [vmem:[%s4782_s26 + $0xd8] sm:$0xf]  ;;  %v3580_v51 = vpack.c.bf16 %v238_v42, %v237_v41  ;;  %v239_v52 = vld [vmem:[%s4784_s7 + $0x20] sm:$0xff]  ;;  %v3568_v54 = vpack.c.bf16 %v94_v46, %v92_v45 }
  0x14   :  { %3557 = vmatpush1.bf16.msra.mxu0 %v3556_v22  ;;  %v434_v50 = vld [vmem:[%s4783_s22 + $0x28] sm:$0xff]  ;;  %3578 = vmatpush1.bf16.msra.mxu1 %v3577_v40  ;;  %v3570_v55 = vpack.c.bf16 %v99_v49, %v97_v48  ;;  %v96_v56 = vld [vmem:[%s4782_s26 + $0xc0] sm:$0xff]  ;;  %v98_v57 = vld [vmem:[%s4782_s26 + $0xd0] sm:$0xf] }
  0x15   :  { %3559 = vmatprep.subr.bf16.mxu0 %v3558_v23  ;;  %3579 = vmatprep.subr.bf16.mxu1 %v3875_v14  ;;  %v240_v53 = vld [vmem:[%s4784_s7 + $0x28] sm:$0xff]  ;;  %v435_v58 = vld [vmem:[%s4783_s22 + $0x30] sm:$0xff]  ;;  %v436_v60 = vld [vmem:[%s4783_s22 + $0x38] sm:$0xff]  ;;  %v3573_v0 = vpack.c.bf16 %v98_v57, %v96_v56 }
  0x16   :  { %v3583_v61 = vpack.c.bf16 %v240_v53, %v239_v52  ;;  %v241_v62 = vld [vmem:[%s4784_s7 + $0x30] sm:$0xff]  ;;  %v242_v63 = vld [vmem:[%s4784_s7 + $0x38] sm:$0xff]  ;;  %v68_v2 = vld [vmem:[%s4787_s24] sm:$0xff] }
  0x17   :  { %452 = vperm.xlu0 %3773, %v433_v47   ;;  %455 = vperm.xlu1 %3774, %v434_v50   ;;  %v3586_v1 = vpack.c.bf16 %v242_v63, %v241_v62  ;;  %v69_v4 = vld [vmem:[%s4787_s24 + $0x8] sm:$0xff]  ;;  %v70_v5 = vld [vmem:[%s4787_s24 + $0x10] sm:$0xff]  ;;  %v71_v6 = vld [vmem:[%s4787_s24 + $0x18] sm:$0xff]  ;;  %s4788_s24 = sld [smem:[#allocation6_spill]]  ;;  %v102_v47 = vlaneseq }
  0x18   :  { %3561 = vmatpush1.bf16.msra.mxu0 %v3560_v30  ;;  %3581 = vmatpush1.bf16.msra.mxu1 %v3580_v51  ;;  %v243_v7 = vld [vmem:[%s4784_s7 + $0x40] sm:$0xff]  ;;  %v244_v8 = vld [vmem:[%s4784_s7 + $0x48] sm:$0xff]  ;;  %v245_v10 = vld [vmem:[%s4784_s7 + $0x50] sm:$0xff] }
  0x19   :  { %3563 = vmatprep.subr.bf16.mxu0 %v3562_v33  ;;  %3582 = vmatprep.subr.bf16.mxu1 %v3875_v14  ;;  %v3589_v9 = vpack.c.bf16 %v244_v8, %v243_v7  ;;  %v246_v11 = vld [vmem:[%s4784_s7 + $0x58] sm:$0xff]  ;;  %v247_v13 = vld [vmem:[%s4784_s7 + $0x60] sm:$0xff]  ;;  %v248_v15 = vld [vmem:[%s4784_s7 + $0x68] sm:$0xff]  ;;  %v103_v48 = vshrl.u32 %v102_v47, 7 }
  0x1a   :  { %v3592_v12 = vpack.c.bf16 %v246_v11, %v245_v10  ;;  %v3595_v16 = vpack.c.bf16 %v248_v15, %v247_v13  ;;  %v249_v17 = vld [vmem:[%s4784_s7 + $0x70] sm:$0xff]  ;;  %v250_v18 = vld [vmem:[%s4784_s7 + $0x78] sm:$0xff]  ;;  %v251_v20 = vld [vmem:[%s4784_s7 + $0x80] sm:$0xff]  ;;  %v438_v13 = vand.u32 127, %v102_v47 }
  0x1b   :  { %458 = vperm.xlu0 %3773, %v435_v58   ;;  %461 = vperm.xlu1 %3774, %v436_v60   ;;  %v3598_v19 = vpack.c.bf16 %v250_v18, %v249_v17  ;;  %v252_v21 = vld [vmem:[%s4784_s7 + $0x88] sm:$0xff]  ;;  %v335_v26 = vld [vmem:[%s4789_s29] sm:$0xff]  ;;  %v337_v28 = vld [vmem:[%s4789_s29 + $0x10] sm:$0xff]  ;;  %v104_v49 = vsub.s32 0, %v103_v48  ;;  %v108_v51 = vsub.s32 1, %v103_v48  ;;  %s3880_s7 = smov 32  }
  0x1c   :  { %3565 = vmatpush1.bf16.msra.mxu0 %v3564_v43  ;;  %3584 = vmatpush1.bf16.msra.mxu1 %v3583_v61  ;;  %v3601_v22 = vpack.c.bf16 %v252_v21, %v251_v20  ;;  %v336_v27 = vld [vmem:[%s4789_s29 + $0x8] sm:$0xff]  ;;  %v338_v30 = vld [vmem:[%s4789_s29 + $0x18] sm:$0xff]  ;;  %v339_v32 = vld [vmem:[%s4789_s29 + $0x20] sm:$0xff] }
  0x1d   :  { %3567 = vmatprep.subr.bf16.mxu0 %v3566_v44  ;;  %3585 = vmatprep.subr.bf16.mxu1 %v3875_v14  ;;  %v487_v23 = vld [vmem:[%s4788_s24] sm:$0xff]  ;;  %v488_v24 = vld [vmem:[%s4788_s24 + $0x8] sm:$0xff]  ;;  %v3604_v29 = vpack.c.bf16 %v336_v27, %v335_v26  ;;  %v3607_v31 = vpack.c.bf16 %v338_v30, %v337_v28  ;;  %v341_v35 = vld [vmem:[%s4789_s29 + $0x30] sm:$0xff] }
  0x1e   :  { %v4194_v25 = vpack.c.bf16 %v488_v24, %v487_v23  ;;  %v340_v33 = vld [vmem:[%s4789_s29 + $0x28] sm:$0xff]  ;;  %v342_v36 = vld [vmem:[%s4789_s29 + $0x38] sm:$0xff]  ;;  %v343_v38 = vld [vmem:[%s4789_s29 + $0x40] sm:$0xff] }
  0x1f   :  { %v3610_v34 = vpack.c.bf16 %v340_v33, %v339_v32  ;;  %v3613_v37 = vpack.c.bf16 %v342_v36, %v341_v35  ;;  %v344_v39 = vld [vmem:[%s4789_s29 + $0x48] sm:$0xff]  ;;  %v345_v41 = vld [vmem:[%s4789_s29 + $0x50] sm:$0xff]  ;;  %v346_v42 = vld [vmem:[%s4789_s29 + $0x58] sm:$0xff] }
  0x20   :  { %3569 = vmatpush1.bf16.msra.mxu0 %v3568_v54  ;;  %3587 = vmatpush1.bf16.msra.mxu1 %v3586_v1  ;;  %v3616_v40 = vpack.c.bf16 %v344_v39, %v343_v38  ;;  %v3619_v43 = vpack.c.bf16 %v346_v42, %v345_v41  ;;  %v347_v44 = vld [vmem:[%s4789_s29 + $0x60] sm:$0xff]  ;;  %v348_v45 = vld [vmem:[%s4789_s29 + $0x68] sm:$0xff]  ;;  %v350_v41 = vld [vmem:[%s4789_s29 + $0x78] sm:$0xff] }
  0x21   :  { %3572 = vmatprep.subr.msk.bf16.mxu0 %vm4118_vm2, %v3570_v55  ;;  %3588 = vmatprep.subr.bf16.mxu1 %v3875_v14  ;;  %v3622_v46 = vpack.c.bf16 %v348_v45, %v347_v44  ;;  %v100_v50 = vld [vmem:[%s4754_s4] sm:$0x3] }
  0x22   :  { %v105_v52 = vrot.slane %v100_v50, %v104_v49  ;;  %v109_v54 = vrot.slane %v100_v50, %v108_v51  ;;  %v2984_v44 = vld [vmem:[%s4756_s6] ss:$0 sm:$0xff]  ;;  %v3013_v49 = vld [vmem:[%s4755_s10 + $0x8] sm:$0xff] }
  0x24   :  { %3575 = vmatpush1.bf16.msk.msra.mxu0 %vm4118_vm2, %v3573_v0  ;;  %3590 = vmatpush1.bf16.msra.mxu1 %v3589_v9  ;;  %vm2972_vm2 = vcmask 199680  }
  0x25   :  { %3603 = vmatprep.subr.bf16.mxu0 %v3875_v14  ;;  %3591 = vmatprep.subr.bf16.mxu1 %v3875_v14 }
  0x27   :  { %2980 = vmatmul.mubr.msk.f32.vlgmr.msra.gmra.mrb[0].mxu0 %vm112_vm3, %v68_v2 }
  0x28   :  { %202 = vmatprep.mubr.f32.mxu0 %v3873_v3  ;;  %3593 = vmatpush1.bf16.msra.mxu1 %v3592_v12 }
  0x29   :  { %3594 = vmatprep.subr.bf16.mxu1 %v3875_v14  ;;  %3605 = vmatpush3.bf16.msra.mxu0 %v3604_v29  ;;  %v489_v29 = vld [vmem:[%s4788_s24 + $0x10] sm:$0xf] }
  0x2a   :  { %3606 = vmatprep.subr.bf16.mxu0 %v3875_v14 }
  0x2b   :  { %2981 = vmatmul.mubr.msk.f32.gmra.mrb[2].mxu0 %vm112_vm3, %v69_v4 }
  0x2c   :  { %208 = vmatprep.mubr.f32.mxu0 %v3873_v3  ;;  %3596 = vmatpush1.bf16.msra.mxu1 %v3595_v16 }
  0x2d   :  { %3597 = vmatprep.subr.bf16.mxu1 %v3875_v14  ;;  %3608 = vmatpush3.bf16.msra.mxu0 %v3607_v31 }
  0x2e   :  { %3609 = vmatprep.subr.bf16.mxu0 %v3875_v14 }
  0x2f   :  { %2982 = vmatmul.mubr.msk.f32.gmra.mrb[4].mxu0 %vm112_vm3, %v70_v5 }
  0x30   :  { %214 = vmatprep.mubr.f32.mxu0 %v3873_v3  ;;  %3599 = vmatpush1.bf16.msra.mxu1 %v3598_v19 }
  0x31   :  { %3600 = vmatprep.subr.bf16.mxu1 %v3875_v14  ;;  %3611 = vmatpush3.bf16.msra.mxu0 %v3610_v34 }
  0x32   :  { %3612 = vmatprep.subr.bf16.mxu0 %v3875_v14 }
  0x33   :  { %2983 = vmatmul.mubr.msk.f32.gmra.mrb[6].mxu0 %vm112_vm3, %v71_v6 }
  0x34   :  { %3602 = vmatpush1.bf16.msra.mxu1 %v3601_v22  ;;  %3256 = vmatprep.mubr.msk.f32.mxu0 %vm3877_vm14, %v3873_v3 }
  0x35   :  { %3628 = vmatprep.subr.bf16.mxu1 %v4194_v25  ;;  %3614 = vmatpush3.bf16.msra.mxu0 %v3613_v37 }
  0x36   :  { %3615 = vmatprep.subr.bf16.mxu0 %v3875_v14 }
  0x39   :  { %3617 = vmatpush3.bf16.msra.mxu0 %v3616_v40  ;;  %v349_v40 = vld [vmem:[%s4789_s29 + $0x70] sm:$0xff] }
  0x3a   :  { %3618 = vmatprep.subr.bf16.mxu0 %v3875_v14  ;;  %v3625_v42 = vpack.c.bf16 %v350_v41, %v349_v40 }
  0x3d   :  { %3620 = vmatpush3.bf16.msra.mxu0 %v3619_v43  ;;  %v623_v43 = vld [vmem:[%s4755_s10] sm:$0xff]  ;;  %s3878_s10 = smov 64  }
  0x3e   :  { %3621 = vmatprep.subr.bf16.mxu0 %v3875_v14 }
  0x41   :  { %3623 = vmatpush3.bf16.msra.mxu0 %v3622_v46 }
  0x42   :  { %3624 = vmatprep.subr.bf16.mxu0 %v3875_v14 }
  0x45   :  { %3626 = vmatpush3.bf16.msra.mxu0 %v3625_v42 }
  0x46   :  { %3277 = vmatprep.subr.mxu0 %v623_v43 }
  0x8e   :  { %v441_v10 = vpop.permute.xlu0 %440  ;;  %v447_v20 = vpop.permute.xlu1 %446 }
  0x8f   :  { %vm463_vm4 = vcmp.eq.s32.totalorder %v441_v10, %v438_v13  ;;  %vm465_vm7 = vcmp.eq.s32.totalorder %v447_v20, %v438_v13 }
  0x90   :  { %v2987_v27 = vsel %vm463_vm4, 1.0, %v3873_v3  ;;  %v2989_v31 = vsel %vm465_vm7, 1.0, %v3873_v3 }
  0x92   :  { %v444_v23 = vpop.permute.xlu0 %443  ;;  %v450_v28 = vpop.permute.xlu1 %449 }
  0x93   :  { %vm464_vm8 = vcmp.eq.s32.totalorder %v444_v23, %v438_v13  ;;  %vm466_vm9 = vcmp.eq.s32.totalorder %v450_v28, %v438_v13 }
  0x94   :  { %v2988_v32 = vsel %vm464_vm8, 1.0, %v3873_v3  ;;  %v2990_v34 = vsel %vm466_vm9, 1.0, %v3873_v3 }
  0x96   :  { %v453_v30 = vpop.permute.xlu0 %452  ;;  %v456_v33 = vpop.permute.xlu1 %455 }
  0x97   :  { %vm467_vm10 = vcmp.eq.s32.totalorder %v453_v30, %v438_v13  ;;  %vm468_vm11 = vcmp.eq.s32.totalorder %v456_v33, %v438_v13 }
  0x98   :  { %v2991_v35 = vsel %vm467_vm10, 1.0, %v3873_v3  ;;  %v2992_v37 = vsel %vm468_vm11, 1.0, %v3873_v3 }
  0x9a   :  { %v462_v36 = vpop.permute.xlu1 %461 }
  0x9b   :  { %vm470_vm13 = vcmp.eq.s32.totalorder %v462_v36, %v438_v13 }
  0x9c   :  { %v2994_v39 = vsel %vm470_vm13, 1.0, %v3873_v3 }
  0xfa   :  { %v198_v53 = vpop.f32.mrb[0].mxu0 }
  0xfb   :  { %v200_v55 = vpop.f32.mrb[1].mxu0  ;;  %v199_v56 = vadd.f32 %v198_v53, %v105_v52  ;;  %v876_v53 = vld [vmem:[%s4757_s12] sm:$0xff] }
  0xfc   :  { %v201_v57 = vadd.f32 %v200_v55, %v109_v54  ;;  %v877_v55 = vld [vmem:[%s4757_s12 + $0x8] sm:$0xff] }
  0xfd   :  { %v221_v62 = vmax.f32 %v199_v56, 0.0  ;;  %v3024_v56 = vld [vmem:[%s4757_s12 + $0x20] sm:$0xff] }
  0xfe   :  { %v204_v58 = vpop.f32.mrb[2].mxu0  ;;  %v222_v0 = vmax.f32 %v201_v57, 0.0  ;;  %v3025_v57 = vld [vmem:[%s4757_s12 + $0x28] sm:$0xff] }
  0xff   :  { %v205_v59 = vadd.f32 %v204_v58, %v105_v52  ;;  %v206_v60 = vpop.f32.mrb[3].mxu0 }
 0x100   :  { %v207_v61 = vadd.f32 %v206_v60, %v109_v54  ;;  %v4309_v60 = vpack.c.bf16 %v3025_v57, %v3024_v56 }
 0x101   :  { %v223_v63 = vmax.f32 %v205_v59, 0.0  ;;  %v4307_v59 = vpack.c.bf16 %v877_v55, %v876_v53 }
 0x102   :  { %v224_v1 = vmax.f32 %v207_v61, 0.0  ;;  %v210_v2 = vpop.f32.mrb[4].mxu0 }
 0x103   :  { %v229_v4 = vmax.f32 %v221_v62, %v223_v63  ;;  %v212_v5 = vpop.f32.mrb[5].mxu0  ;;  %v211_v7 = vadd.f32 %v210_v2, %v105_v52  ;;  %v878_v62 = vld [vmem:[%s4757_s12 + $0x10] sm:$0xff]  ;;  %v879_v63 = vld [vmem:[%s4757_s12 + $0x18] sm:$0xff] }
 0x104   :  { %v230_v6 = vmax.f32 %v222_v0, %v224_v1  ;;  %v213_v8 = vadd.f32 %v212_v5, %v109_v54  ;;  %v3026_v0 = vld [vmem:[%s4757_s12 + $0x30] sm:$0xff]  ;;  %v3027_v1 = vld [vmem:[%s4757_s12 + $0x38] sm:$0xff] }
 0x105   :  { %v225_v16 = vmax.f32 %v211_v7, 0.0 }
 0x106   :  { %v216_v9 = vpop.f32.mrb[6].mxu0  ;;  %v226_v18 = vmax.f32 %v213_v8, 0.0 }
 0x107   :  { %v217_v11 = vadd.f32 %v216_v9, %v105_v52  ;;  %v218_v12 = vpop.f32.mrb[7].mxu0  ;;  %v3004_v9 = vld [vmem:[%s4758_s11] ss:$0 sm:$0xff] }
 0x108   :  { %v219_v15 = vadd.f32 %v218_v12, %v109_v54 }
 0x109   :  { %v227_v17 = vmax.f32 %v217_v11, 0.0 }
 0x10a   :  { %v228_v19 = vmax.f32 %v219_v15, 0.0 }
 0x10b   :  { %v231_v21 = vmax.f32 %v225_v16, %v227_v17 }
 0x10c   :  { %v232_v22 = vmax.f32 %v226_v18, %v228_v19  ;;  %v3015_v18 = vld [vmem:[%s4758_s11 + $0x1] ss:$0 sm:$0xff] }
 0x10d   :  { %v233_v24 = vmax.f32 %v229_v4, %v231_v21  ;;  %v4328_v4 = vpack.c.bf16 %v879_v63, %v878_v62 }
 0x10e   :  { %v234_v26 = vmax.f32 %v230_v6, %v232_v22  ;;  %v4332_v6 = vpack.c.bf16 %v3027_v1, %v3026_v0 }
 0x110   :  { %2985 = vmatprep.mubr.msk.f32.mxu1 %vm260_vm5, %v234_v26 }
 0x111   :  { %329 = vmatmul.mubr.f32.vlgmr.msra.gmra.mrb[0].mxu1 %v233_v24 }
 0x112   :  { %3630 = vmatpush3.bf16.msra.mxu1 %v4194_v25  ;;  %3265 = vmatprep.mubr.msk.f32.mxu1 %vm490_vm6, %v2987_v27  ;;  %v459_v25 = vpop.permute.xlu0 %458 }
 0x113   :  { %3263 = vmatprep.subr.msk.mxu1 %vm125_vm0, %v489_v29  ;;  %vm469_vm12 = vcmp.eq.s32.totalorder %v459_v25, %v438_v13 }
 0x114   :  { %v2993_v38 = vsel %vm469_vm12, 1.0, %v3873_v3 }
 0x116   :  { %3264 = vmatpush3.msk.msra.mxu1 %vm125_vm0, %v489_v29  ;;  %vm900_vm0 = vcmask 261120  }
 0x117   :  { %3266 = vmatmul.mubr.msk.f32.vlgmr.msra.gmra.mrb[2].mxu1 %vm490_vm6, %v2988_v32  ;;  %3763 = vmatprep.subr.mxu1 %v623_v43 }
 0x118   :  { %3268 = vmatprep.mubr.msk.f32.mxu1 %vm490_vm6, %v2989_v31  ;;  %3764 = vmatpush3.msra.mxu1 %v623_v43 }
 0x119   :  { %3631 = vmatprep.subr.bf16.mxu1 %v3875_v14 }
 0x11b   :  { %3269 = vmatmul.mubr.msk.f32.gmra.mrb[4].mxu1 %vm490_vm6, %v2990_v34 }
 0x11c   :  { %3271 = vmatprep.mubr.msk.f32.mxu1 %vm490_vm6, %v2991_v35  ;;  %v4397_v35 = vld [vmem:[%s4759_s13] ss:$0 sm:$0xff] }
 0x11f   :  { %3272 = vmatmul.mubr.msk.f32.gmra.mrb[6].mxu1 %vm490_vm6, %v2992_v37 }
 0x120   :  { %3274 = vmatprep.mubr.msk.f32.mxu1 %vm490_vm6, %v2993_v38 }
 0x123   :  { %3275 = vmatmul.mubr.msk.f32.gmra.mrb[8].mxu1 %vm490_vm6, %v2994_v39 }
 0x1e4   :  { %v330_v45 = vpop.f32.mrb[0].mxu1 }
 0x1e5   :  { %v331_v46 = vadd.f32 %v2984_v44, %v330_v45  ;;  %v332_v47 = vpop.f32.mrb[1].mxu1 }
 0x1e7   :  { %v334_v48 = vmax.f32 %v331_v46, 0.0  ;;  %v4410_v46 = vld [vmem:[%s4759_s13 + $0x1] ss:$0 sm:$0xff]  ;;  %s3879_s13 = smov 96  }
 0x1e9   :  { %3257 = vmatmul.mubr.f32.vlgmr.msra.gmra.mrb[8].mxu0 %v334_v48 }
 0x1ea   :  { %v3267_v50 = vpop.f32.mrb[2].mxu1  ;;  %3278 = vmatpush3.msra.mxu0 %v623_v43 }
 0x1eb   :  { %v584_v51 = vpop.f32.mrb[3].mxu1  ;;  %3291 = vmatprep.subr.mxu0 %v3013_v49 }
 0x1ec   :  { %3279 = vmatprep.mubr.msk.f32.mxu0 %vm631_vm15, %v584_v51 }
 0x1ed   :  { %3280 = vmatmul.mubr.msk.f32.vlgmr.msra.gmra.mrb[10].mxu0 %vm631_vm15, %v3267_v50 }
 0x1ee   :  { %v3270_v52 = vpop.f32.mrb[4].mxu1  ;;  %3292 = vmatpush3.msra.mxu0 %v3013_v49 }
 0x1ef   :  { %v594_v54 = vpop.f32.mrb[5].mxu1  ;;  %3637 = vmatprep.subr.bf16.mxu0 %v3875_v14 }
 0x1f0   :  { %3282 = vmatprep.mubr.msk.f32.mxu0 %vm631_vm15, %v594_v54 }
 0x1f1   :  { %3283 = vmatmul.mubr.msk.f32.gmra.mrb[12].mxu0 %vm631_vm15, %v3270_v52 }
 0x1f2   :  { %v3273_v58 = vpop.f32.mrb[6].mxu1  ;;  %3293 = vmatprep.mubr.msk.f32.mxu0 %vm631_vm15, %v584_v51 }
 0x1f3   :  { %v604_v61 = vpop.f32.mrb[7].mxu1 }
 0x1f4   :  { %3285 = vmatprep.mubr.msk.f32.mxu1 %vm631_vm15, %v604_v61 }
 0x1f5   :  { %3286 = vmatmul.mubr.msk.f32.vlgmr.msra.gmra.mrb[10].mxu1 %vm631_vm15, %v3273_v58  ;;  %3294 = vmatmul.mubr.msk.f32.vlgmr.msra.gmra.mrb[14].mxu0 %vm631_vm15, %v3267_v50 }
 0x1f6   :  { %v3276_v2 = vpop.f32.mrb[8].mxu1  ;;  %3633 = vmatpush3.bf16.msra.mxu1 %v4307_v59  ;;  %3639 = vmatpush3.bf16.msra.mxu0 %v4309_v60 }
 0x1f7   :  { %v614_v5 = vpop.f32.mrb[9].mxu1  ;;  %3296 = vmatprep.mubr.msk.f32.mxu0 %vm631_vm15, %v594_v54  ;;  %3634 = vmatprep.subr.bf16.mxu1 %v3875_v14 }
 0x1f8   :  { %3288 = vmatprep.mubr.msk.f32.mxu1 %vm631_vm15, %v614_v5  ;;  %3640 = vmatprep.subr.bf16.mxu0 %v3875_v14 }
 0x1f9   :  { %3289 = vmatmul.mubr.msk.f32.gmra.mrb[12].mxu1 %vm631_vm15, %v3276_v2  ;;  %3297 = vmatmul.mubr.msk.f32.gmra.mrb[16].mxu0 %vm631_vm15, %v3270_v52 }
 0x1fa   :  { %3636 = vmatpush3.bf16.msra.mxu1 %v4328_v4  ;;  %3299 = vmatprep.mubr.msk.f32.mxu0 %vm631_vm15, %v604_v61 }
 0x1fb   :  { %3313 = vmatprep.mubr.msk.f32.mxu1 %vm3877_vm14, %v3873_v3  ;;  %3642 = vmatpush3.bf16.msra.mxu0 %v4332_v6 }
 0x1fc   :  { %3643 = vmatprep.subr.bf16.mxu1 %v3875_v14  ;;  %3649 = vmatprep.subr.bf16.mxu0 %v3875_v14 }
 0x1fd   :  { %3314 = vmatmul.mubr.f32.vlgmr.msra.gmra.mrb[14].mxu1 %v3873_v3  ;;  %3300 = vmatmul.mubr.msk.f32.gmra.mrb[18].mxu0 %vm631_vm15, %v3273_v58 }
 0x1fe   :  { %3302 = vmatprep.mubr.msk.f32.mxu0 %vm631_vm15, %v614_v5  ;;  %3645 = vmatpush3.bf16.msra.mxu1 %v4307_v59 }
 0x1ff   :  { %3646 = vmatprep.subr.bf16.mxu1 %v3875_v14  ;;  %3335 = vmatprep.mubr.msk.f32.mxu1 %vm3877_vm14, %v3873_v3 }
 0x201   :  { %3303 = vmatmul.mubr.msk.f32.gmra.mrb[20].mxu0 %vm631_vm15, %v3276_v2 }
 0x202   :  { %3324 = vmatprep.mubr.msk.f32.mxu0 %vm3877_vm14, %v3873_v3  ;;  %3648 = vmatpush3.bf16.msra.mxu1 %v4328_v4 }
 0x203   :  { %3655 = vmatprep.subr.bf16.mxu1 %v3875_v14 }
 0x205   :  { %3325 = vmatmul.mubr.f32.vlgmr.msra.gmra.mrb[22].mxu0 %v3873_v3 }
 0x206   :  { %3651 = vmatpush3.bf16.msra.mxu0 %v4309_v60  ;;  %3346 = vmatprep.mubr.msk.f32.mxu0 %vm3877_vm14, %v3873_v3 }
 0x207   :  { %3652 = vmatprep.subr.bf16.mxu0 %v3875_v14 }
 0x20a   :  { %3654 = vmatpush3.bf16.msra.mxu0 %v4332_v6 }
 0x20b   :  { %3661 = vmatprep.subr.bf16.mxu0 %v3875_v14 }
 0x2bc   :  { %v4364_v7 = vpop.f32.mrb[8].mxu0 }
 0x2bd   :  { %v3258_v8 = vpop.f32.mrb[9].mxu0 }
 0x2c0   :  { %v3281_v10 = vpop.f32.mrb[10].mxu0 }
 0x2c1   :  { %v4369_v11 = vadd.f32 %v3281_v10, %v3004_v9  ;;  %v722_v12 = vpop.f32.mrb[11].mxu0 }
 0x2c2   :  { %v723_v50 = vadd.f32 %v3004_v9, %v722_v12 }
 0x2c4   :  { %v3284_v13 = vpop.f32.mrb[12].mxu0 }
 0x2c5   :  { %v4371_v15 = vadd.f32 %v3284_v13, %v3004_v9  ;;  %v732_v16 = vpop.f32.mrb[13].mxu0 }
 0x2c6   :  { %v4373_v17 = vadd.f32 %v3004_v9, %v732_v16 }
 0x2c8   :  { %v3287_v19 = vpop.f32.mrb[10].mxu1  ;;  %v3295_v20 = vpop.f32.mrb[14].mxu0 }
 0x2c9   :  { %v4378_v21 = vadd.f32 %v3287_v19, %v3004_v9  ;;  %v742_v22 = vpop.f32.mrb[11].mxu1  ;;  %v4380_v23 = vadd.f32 %v3295_v20, %v3015_v18  ;;  %v837_v24 = vpop.f32.mrb[15].mxu0 }
 0x2ca   :  { %v4382_v26 = vadd.f32 %v3004_v9, %v742_v22  ;;  %v4384_v27 = vadd.f32 %v3015_v18, %v837_v24 }
 0x2cc   :  { %v3290_v28 = vpop.f32.mrb[12].mxu1  ;;  %v3298_v29 = vpop.f32.mrb[16].mxu0 }
 0x2cd   :  { %v4386_v30 = vadd.f32 %v3290_v28, %v3004_v9  ;;  %v752_v31 = vpop.f32.mrb[13].mxu1  ;;  %v4388_v32 = vadd.f32 %v3298_v29, %v3015_v18  ;;  %v847_v33 = vpop.f32.mrb[17].mxu0 }
 0x2ce   :  { %v4390_v25 = vadd.f32 %v3004_v9, %v752_v31  ;;  %v4392_v34 = vadd.f32 %v3015_v18, %v847_v33 }
 0x2d0   :  { %v970_v36 = vpop.f32.mrb[14].mxu1  ;;  %v3301_v37 = vpop.f32.mrb[18].mxu0 }
 0x2d1   :  { %v971_v38 = vadd.f32 %v4397_v35, %v970_v36  ;;  %v4400_v39 = vadd.f32 %v3301_v37, %v3015_v18  ;;  %v3315_v40 = vpop.f32.mrb[15].mxu1  ;;  %v857_v41 = vpop.f32.mrb[19].mxu0 }
 0x2d2   :  { %v4402_v42 = vadd.f32 %v3015_v18, %v857_v41 }
 0x2d3   :  { %982 = vrot.lane.b32.xlu0 %v971_v38, %s3878_s10  ;;  %v974_v51 = vadd.f32 %v971_v38, %v723_v50 }
 0x2d4   :  { %v3304_v43 = vpop.f32.mrb[20].mxu0 }
 0x2d5   :  { %v867_v44 = vpop.f32.mrb[21].mxu0  ;;  %v3031_v52 = vmul.f32 -1.442695, %v974_v51  ;;  %v873_v53 = vadd.f32 %v3304_v43, %v3015_v18 }
 0x2d6   :  { %v4405_v45 = vadd.f32 %v3015_v18, %v867_v44 }
 0x2d7   :  { %3775 = vpow2.f32 %v3031_v52 }
 0x2d8   :  { %v1069_v47 = vpop.f32.mrb[22].mxu0 }
 0x2d9   :  { %v1070_v48 = vadd.f32 %v4410_v46, %v1069_v47  ;;  %v3326_v49 = vpop.f32.mrb[23].mxu0 }
 0x2db   :  { %1081 = vrot.lane.b32.xlu1 %v1070_v48, %s3878_s10  ;;  %v1073_v54 = vadd.f32 %v1070_v48, %v873_v53 }
 0x2dd   :  { %v3032_v55 = vmul.f32 -1.442695, %v1073_v54 }
 0x2df   :  { %3777 = vpow2.f32 %v3032_v55 }
 0x2e1   :  { %v3776_v56 = vpop.eup %3775 }
 0x2e2   :  { %v978_v57 = vadd.f32 1.0, %v3776_v56 }
 0x2e4   :  { %3779 = vrcp.f32 %v978_v57 }
 0x2e9   :  { %v3778_v58 = vpop.eup %3777 }
 0x2ea   :  { %v1077_v61 = vadd.f32 1.0, %v3778_v58 }
 0x2ec   :  { %3781 = vrcp.f32 %v1077_v61 }
 0x2ee   :  { %v3780_v62 = vpop.eup %3779 }
 0x2f6   :  { %v3782_v1 = vpop.eup %3781 }
 0x345   :  { %v983_v63 = vpop.permute.xlu0 %982 }
 0x346   :  { %v985_v0 = vmul.f32 %v3780_v62, %v983_v63 }
 0x348   :  { %987 = vrot.lane.b32.xlu0 %v985_v0, %s3878_s10 }
 0x34d   :  { %v1082_v2 = vpop.permute.xlu1 %1081 }
 0x34e   :  { %v1084_v5 = vmul.f32 %v3782_v1, %v1082_v2 }
 0x350   :  { %1086 = vrot.lane.b32.xlu1 %v1084_v5, %s3878_s10 }
 0x3ba   :  { %v988_v8 = vpop.permute.xlu0 %987 }
 0x3bb   :  { %v990_v9 = vadd.f32 %v988_v8, %v723_v50 }
 0x3bd   :  { %3783 = vtanh.f32 %v990_v9 }
 0x3c2   :  { %v1087_v10 = vpop.permute.xlu1 %1086 }
 0x3c3   :  { %v1089_v12 = vadd.f32 %v1087_v10, %v873_v53 }
 0x3c5   :  { %3785 = vtanh.f32 %v1089_v12 }
 0x3c7   :  { %v3784_v13 = vpop.eup %3783 }
 0x3c8   :  { %v992_v16 = vsub.f32 0.0, %v3784_v13 }
 0x3ca   :  { %994 = vrot.lane.b32.xlu0 %v992_v16, %s3879_s13 }
 0x3cf   :  { %v3786_v18 = vpop.eup %3785 }
 0x3d0   :  { %v1091_v19 = vsub.f32 0.0, %v3786_v18 }
 0x3d2   :  { %1093 = vrot.lane.b32.xlu1 %v1091_v19, %s3879_s13 }
 0x43c   :  { %v995_v20 = vpop.permute.xlu0 %994 }
 0x43d   :  { %v997_v22 = vmul.f32 %v3780_v62, %v995_v20 }
 0x43f   :  { %999 = vrot.lane.b32.xlu0 %v997_v22, %s3880_s7 }
 0x444   :  { %v1094_v24 = vpop.permute.xlu1 %1093 }
 0x445   :  { %v1096_v28 = vmul.f32 %v3782_v1, %v1094_v24 }
 0x447   :  { %1098 = vrot.lane.b32.xlu1 %v1096_v28, %s3880_s7 }
 0x4b1   :  { %v1000_v29 = vpop.permute.xlu0 %999 }
 0x4b2   :  { %v1002_v31 = vadd.f32 %v3784_v13, %v1000_v29 }
 0x4b4   :  { %1103 = vrot.lane.b32.xlu0 %v1002_v31, %s3878_s10 }
 0x4b9   :  { %v1099_v33 = vpop.permute.xlu1 %1098 }
 0x4ba   :  { %v1101_v36 = vadd.f32 %v3786_v18, %v1099_v33 }
 0x4bc   :  { %1207 = vrot.lane.b32.xlu1 %v1101_v36, %s3878_s10 }
 0x526   :  { %v1104_v37 = vpop.permute.xlu0 %1103 }
 0x527   :  { %3336 = vmatmul.mubr.msk.f32.vlgmr.msra.gmra.mrb[16].mxu1 %vm900_vm0, %v1104_v37 }
 0x528   :  { %3657 = vmatpush3.bf16.msra.mxu1 %v4307_v59  ;;  %3357 = vmatprep.mubr.msk.f32.mxu1 %vm3877_vm14, %v3873_v3 }
 0x529   :  { %3658 = vmatprep.subr.bf16.mxu1 %v3875_v14 }
 0x52c   :  { %3660 = vmatpush3.bf16.msra.mxu1 %v4328_v4 }
 0x52d   :  { %3667 = vmatprep.subr.bf16.mxu1 %v3875_v14 }
 0x52e   :  { %v1208_v38 = vpop.permute.xlu1 %1207 }
 0x52f   :  { %3347 = vmatmul.mubr.msk.f32.vlgmr.msra.gmra.mrb[24].mxu0 %vm900_vm0, %v1208_v38 }
 0x530   :  { %3663 = vmatpush3.bf16.msra.mxu0 %v4309_v60  ;;  %3368 = vmatprep.mubr.msk.f32.mxu0 %vm3877_vm14, %v3873_v3 }
 0x531   :  { %3664 = vmatprep.subr.bf16.mxu0 %v3875_v14 }
 0x534   :  { %3666 = vmatpush3.bf16.msra.mxu0 %v4332_v6 }
 0x535   :  { %3673 = vmatprep.subr.bf16.mxu0 %v3875_v14 }
 0x5fa   :  { %v1173_v40 = vpop.f32.mrb[16].mxu1 }
 0x5fb   :  { %v1174_v41 = vadd.f32 %v4397_v35, %v1173_v40  ;;  %v3337_v43 = vpop.f32.mrb[17].mxu1 }
 0x5fd   :  { %1185 = vrot.lane.b32.xlu0 %v1174_v41, %s3878_s10  ;;  %v1177_v49 = vadd.f32 %v1174_v41, %v4369_v11 }
 0x5ff   :  { %v3034_v50 = vmul.f32 -1.442695, %v1177_v49 }
 0x601   :  { %3787 = vpow2.f32 %v3034_v50 }
 0x602   :  { %v1277_v44 = vpop.f32.mrb[24].mxu0 }
 0x603   :  { %v1278_v47 = vadd.f32 %v4410_v46, %v1277_v44  ;;  %v3348_v48 = vpop.f32.mrb[25].mxu0 }
 0x605   :  { %1289 = vrot.lane.b32.xlu1 %v1278_v47, %s3878_s10  ;;  %v1281_v51 = vadd.f32 %v1278_v47, %v4405_v45 }
 0x607   :  { %v3036_v52 = vmul.f32 -1.442695, %v1281_v51 }
 0x609   :  { %3789 = vpow2.f32 %v3036_v52 }
 0x60b   :  { %v3788_v53 = vpop.eup %3787 }
 0x60c   :  { %v1181_v54 = vadd.f32 1.0, %v3788_v53 }
 0x60e   :  { %3791 = vrcp.f32 %v1181_v54 }
 0x613   :  { %v3790_v55 = vpop.eup %3789 }
 0x614   :  { %v1285_v56 = vadd.f32 1.0, %v3790_v55 }
 0x616   :  { %3793 = vrcp.f32 %v1285_v56 }
 0x618   :  { %v3792_v57 = vpop.eup %3791 }
 0x620   :  { %v3794_v62 = vpop.eup %3793 }
 0x66f   :  { %v1186_v58 = vpop.permute.xlu0 %1185 }
 0x670   :  { %v1188_v61 = vmul.f32 %v3792_v57, %v1186_v58 }
 0x672   :  { %1190 = vrot.lane.b32.xlu0 %v1188_v61, %s3878_s10 }
 0x677   :  { %v1290_v63 = vpop.permute.xlu1 %1289 }
 0x678   :  { %v1292_v0 = vmul.f32 %v3794_v62, %v1290_v63 }
 0x67a   :  { %1294 = vrot.lane.b32.xlu1 %v1292_v0, %s3878_s10 }
 0x6e4   :  { %v1191_v1 = vpop.permute.xlu0 %1190 }
 0x6e5   :  { %v1193_v2 = vadd.f32 %v1191_v1, %v4369_v11 }
 0x6e7   :  { %3795 = vtanh.f32 %v1193_v2 }
 0x6ec   :  { %v1295_v5 = vpop.permute.xlu1 %1294 }
 0x6ed   :  { %v1297_v8 = vadd.f32 %v1295_v5, %v4405_v45 }
 0x6ef   :  { %3797 = vtanh.f32 %v1297_v8 }
 0x6f1   :  { %v3796_v9 = vpop.eup %3795 }
 0x6f2   :  { %v1195_v10 = vsub.f32 %v1002_v31, %v3796_v9 }
 0x6f4   :  { %1197 = vrot.lane.b32.xlu0 %v1195_v10, %s3879_s13 }
 0x6f9   :  { %v3798_v12 = vpop.eup %3797 }
 0x6fa   :  { %v1299_v13 = vsub.f32 %v1101_v36, %v3798_v12 }
 0x6fc   :  { %1301 = vrot.lane.b32.xlu1 %v1299_v13, %s3879_s13 }
 0x766   :  { %v1198_v16 = vpop.permute.xlu0 %1197 }
 0x767   :  { %v1200_v18 = vmul.f32 %v3792_v57, %v1198_v16 }
 0x769   :  { %1202 = vrot.lane.b32.xlu0 %v1200_v18, %s3880_s7 }
 0x76e   :  { %v1302_v19 = vpop.permute.xlu1 %1301 }
 0x76f   :  { %v1304_v20 = vmul.f32 %v3794_v62, %v1302_v19 }
 0x771   :  { %1306 = vrot.lane.b32.xlu1 %v1304_v20, %s3880_s7 }
 0x7db   :  { %v1203_v11 = vpop.permute.xlu0 %1202 }
 0x7dc   :  { %v1205_v22 = vadd.f32 %v3796_v9, %v1203_v11 }
 0x7de   :  { %1311 = vrot.lane.b32.xlu0 %v1205_v22, %s3878_s10 }
 0x7e3   :  { %v1307_v45 = vpop.permute.xlu1 %1306 }
 0x7e4   :  { %v1309_v24 = vadd.f32 %v3798_v12, %v1307_v45 }
 0x7e6   :  { %1415 = vrot.lane.b32.xlu1 %v1309_v24, %s3878_s10 }
 0x850   :  { %v1312_v28 = vpop.permute.xlu0 %1311 }
 0x851   :  { %3358 = vmatmul.mubr.msk.f32.vlgmr.msra.gmra.mrb[18].mxu1 %vm900_vm0, %v1312_v28 }
 0x852   :  { %3669 = vmatpush3.bf16.msra.mxu1 %v4307_v59  ;;  %3379 = vmatprep.mubr.msk.f32.mxu1 %vm3877_vm14, %v3873_v3 }
 0x853   :  { %3670 = vmatprep.subr.bf16.mxu1 %v3875_v14 }
 0x856   :  { %3672 = vmatpush3.bf16.msra.mxu1 %v4328_v4 }
 0x857   :  { %3679 = vmatprep.subr.bf16.mxu1 %v3875_v14 }
 0x858   :  { %v1416_v29 = vpop.permute.xlu1 %1415 }
 0x859   :  { %3369 = vmatmul.mubr.msk.f32.vlgmr.msra.gmra.mrb[26].mxu0 %vm900_vm0, %v1416_v29 }
 0x85a   :  { %3675 = vmatpush3.bf16.msra.mxu0 %v4309_v60  ;;  %3390 = vmatprep.mubr.msk.f32.mxu0 %vm3877_vm14, %v3873_v3 }
 0x85b   :  { %3676 = vmatprep.subr.bf16.mxu0 %v3875_v14 }
 0x85e   :  { %3678 = vmatpush3.bf16.msra.mxu0 %v4332_v6 }
 0x85f   :  { %3685 = vmatprep.subr.bf16.mxu0 %v3875_v14 }
 0x924   :  { %v1381_v31 = vpop.f32.mrb[18].mxu1 }
 0x925   :  { %v1382_v33 = vadd.f32 %v4397_v35, %v1381_v31  ;;  %v3359_v36 = vpop.f32.mrb[19].mxu1 }
 0x927   :  { %1393 = vrot.lane.b32.xlu0 %v1382_v33, %s3878_s10  ;;  %v1385_v41 = vadd.f32 %v1382_v33, %v4373_v17 }
 0x929   :  { %v3038_v43 = vmul.f32 -1.442695, %v1385_v41 }
 0x92b   :  { %3799 = vpow2.f32 %v3038_v43 }
 0x92c   :  { %v1485_v37 = vpop.f32.mrb[26].mxu0 }
 0x92d   :  { %v1486_v38 = vadd.f32 %v4410_v46, %v1485_v37  ;;  %v3370_v40 = vpop.f32.mrb[27].mxu0 }
 0x92f   :  { %1497 = vrot.lane.b32.xlu1 %v1486_v38, %s3878_s10  ;;  %v1489_v44 = vadd.f32 %v1486_v38, %v4400_v39 }
 0x931   :  { %v3040_v47 = vmul.f32 -1.442695, %v1489_v44 }
 0x933   :  { %3801 = vpow2.f32 %v3040_v47 }
 0x935   :  { %v3800_v48 = vpop.eup %3799 }
 0x936   :  { %v1389_v49 = vadd.f32 1.0, %v3800_v48 }
 0x938   :  { %3803 = vrcp.f32 %v1389_v49 }
 0x93d   :  { %v3802_v50 = vpop.eup %3801 }
 0x93e   :  { %v1493_v51 = vadd.f32 1.0, %v3802_v50 }
 0x940   :  { %3805 = vrcp.f32 %v1493_v51 }
 0x942   :  { %v3804_v52 = vpop.eup %3803 }
 0x94a   :  { %v3806_v55 = vpop.eup %3805 }
 0x999   :  { %v1394_v53 = vpop.permute.xlu0 %1393 }
 0x99a   :  { %v1396_v54 = vmul.f32 %v3804_v52, %v1394_v53 }
 0x99c   :  { %1398 = vrot.lane.b32.xlu0 %v1396_v54, %s3878_s10 }
 0x9a1   :  { %v1498_v56 = vpop.permute.xlu1 %1497 }
 0x9a2   :  { %v1500_v57 = vmul.f32 %v3806_v55, %v1498_v56 }
 0x9a4   :  { %1502 = vrot.lane.b32.xlu1 %v1500_v57, %s3878_s10 }
 0xa0e   :  { %v1399_v58 = vpop.permute.xlu0 %1398 }
 0xa0f   :  { %v1401_v61 = vadd.f32 %v1399_v58, %v4373_v17 }
 0xa11   :  { %3807 = vtanh.f32 %v1401_v61 }
 0xa16   :  { %v1503_v62 = vpop.permute.xlu1 %1502 }
 0xa17   :  { %v1505_v63 = vadd.f32 %v1503_v62, %v4400_v39 }
 0xa19   :  { %3809 = vtanh.f32 %v1505_v63 }
 0xa1b   :  { %v3808_v0 = vpop.eup %3807 }
 0xa1c   :  { %v1403_v1 = vsub.f32 %v1205_v22, %v3808_v0 }
 0xa1e   :  { %1405 = vrot.lane.b32.xlu0 %v1403_v1, %s3879_s13 }
 0xa23   :  { %v3810_v2 = vpop.eup %3809 }
 0xa24   :  { %v1507_v5 = vsub.f32 %v1309_v24, %v3810_v2 }
 0xa26   :  { %1509 = vrot.lane.b32.xlu1 %v1507_v5, %s3879_s13 }
 0xa90   :  { %v1406_v8 = vpop.permute.xlu0 %1405 }
 0xa91   :  { %v1408_v9 = vmul.f32 %v3804_v52, %v1406_v8 }
 0xa93   :  { %1410 = vrot.lane.b32.xlu0 %v1408_v9, %s3880_s7 }
 0xa98   :  { %v1510_v10 = vpop.permute.xlu1 %1509 }
 0xa99   :  { %v1512_v12 = vmul.f32 %v3806_v55, %v1510_v10 }
 0xa9b   :  { %1514 = vrot.lane.b32.xlu1 %v1512_v12, %s3880_s7 }
 0xb05   :  { %v1411_v17 = vpop.permute.xlu0 %1410 }
 0xb06   :  { %v1413_v13 = vadd.f32 %v3808_v0, %v1411_v17 }
 0xb08   :  { %1519 = vrot.lane.b32.xlu0 %v1413_v13, %s3878_s10 }
 0xb0d   :  { %v1515_v39 = vpop.permute.xlu1 %1514 }
 0xb0e   :  { %v1517_v16 = vadd.f32 %v3810_v2, %v1515_v39 }
 0xb10   :  { %1623 = vrot.lane.b32.xlu1 %v1517_v16, %s3878_s10 }
 0xb7a   :  { %v1520_v18 = vpop.permute.xlu0 %1519 }
 0xb7b   :  { %3380 = vmatmul.mubr.msk.f32.vlgmr.msra.gmra.mrb[20].mxu1 %vm900_vm0, %v1520_v18 }
 0xb7c   :  { %3681 = vmatpush3.bf16.msra.mxu1 %v4307_v59  ;;  %3401 = vmatprep.mubr.msk.f32.mxu1 %vm3877_vm14, %v3873_v3 }
 0xb7d   :  { %3682 = vmatprep.subr.bf16.mxu1 %v3875_v14 }
 0xb80   :  { %3684 = vmatpush3.bf16.msra.mxu1 %v4328_v4 }
 0xb81   :  { %3691 = vmatprep.subr.bf16.mxu1 %v3875_v14 }
 0xb82   :  { %v1624_v19 = vpop.permute.xlu1 %1623 }
 0xb83   :  { %3391 = vmatmul.mubr.msk.f32.vlgmr.msra.gmra.mrb[28].mxu0 %vm900_vm0, %v1624_v19 }
 0xb84   :  { %3687 = vmatpush3.bf16.msra.mxu0 %v4309_v60  ;;  %3412 = vmatprep.mubr.msk.f32.mxu0 %vm3877_vm14, %v3873_v3 }
 0xb85   :  { %3688 = vmatprep.subr.bf16.mxu0 %v3875_v14 }
 0xb88   :  { %3690 = vmatpush3.bf16.msra.mxu0 %v4332_v6 }
 0xb89   :  { %3697 = vmatprep.subr.bf16.mxu0 %v3875_v14 }
 0xc4e   :  { %v1589_v20 = vpop.f32.mrb[20].mxu1 }
 0xc4f   :  { %v1590_v11 = vadd.f32 %v4397_v35, %v1589_v20  ;;  %v3381_v22 = vpop.f32.mrb[21].mxu1 }
 0xc51   :  { %1601 = vrot.lane.b32.xlu0 %v1590_v11, %s3878_s10  ;;  %v1593_v29 = vadd.f32 %v1590_v11, %v4371_v15 }
 0xc53   :  { %v3042_v31 = vmul.f32 -1.442695, %v1593_v29 }
 0xc55   :  { %3811 = vpow2.f32 %v3042_v31 }
 0xc56   :  { %v1693_v45 = vpop.f32.mrb[28].mxu0 }
 0xc57   :  { %v1694_v24 = vadd.f32 %v4410_v46, %v1693_v45  ;;  %v3392_v28 = vpop.f32.mrb[29].mxu0 }
 0xc59   :  { %1705 = vrot.lane.b32.xlu1 %v1694_v24, %s3878_s10  ;;  %v1697_v33 = vadd.f32 %v1694_v24, %v4402_v42 }
 0xc5b   :  { %v3044_v36 = vmul.f32 -1.442695, %v1697_v33 }
 0xc5d   :  { %3813 = vpow2.f32 %v3044_v36 }
 0xc5f   :  { %v3812_v37 = vpop.eup %3811 }
 0xc60   :  { %v1597_v38 = vadd.f32 1.0, %v3812_v37 }
 0xc62   :  { %3815 = vrcp.f32 %v1597_v38 }
 0xc67   :  { %v3814_v40 = vpop.eup %3813 }
 0xc68   :  { %v1701_v41 = vadd.f32 1.0, %v3814_v40 }
 0xc6a   :  { %3817 = vrcp.f32 %v1701_v41 }
 0xc6c   :  { %v3816_v43 = vpop.eup %3815 }
 0xc74   :  { %v3818_v48 = vpop.eup %3817 }
 0xcc3   :  { %v1602_v44 = vpop.permute.xlu0 %1601 }
 0xcc4   :  { %v1604_v47 = vmul.f32 %v3816_v43, %v1602_v44 }
 0xcc6   :  { %1606 = vrot.lane.b32.xlu0 %v1604_v47, %s3878_s10 }
 0xccb   :  { %v1706_v49 = vpop.permute.xlu1 %1705 }
 0xccc   :  { %v1708_v50 = vmul.f32 %v3818_v48, %v1706_v49 }
 0xcce   :  { %1710 = vrot.lane.b32.xlu1 %v1708_v50, %s3878_s10 }
 0xd38   :  { %v1607_v51 = vpop.permute.xlu0 %1606 }
 0xd39   :  { %v1609_v52 = vadd.f32 %v1607_v51, %v4371_v15 }
 0xd3b   :  { %3819 = vtanh.f32 %v1609_v52 }
 0xd40   :  { %v1711_v53 = vpop.permute.xlu1 %1710 }
 0xd41   :  { %v1713_v54 = vadd.f32 %v1711_v53, %v4402_v42 }
 0xd43   :  { %3821 = vtanh.f32 %v1713_v54 }
 0xd45   :  { %v3820_v55 = vpop.eup %3819 }
 0xd46   :  { %v1611_v56 = vsub.f32 %v1413_v13, %v3820_v55 }
 0xd48   :  { %1613 = vrot.lane.b32.xlu0 %v1611_v56, %s3879_s13 }
 0xd4d   :  { %v3822_v57 = vpop.eup %3821 }
 0xd4e   :  { %v1715_v58 = vsub.f32 %v1517_v16, %v3822_v57 }
 0xd50   :  { %1717 = vrot.lane.b32.xlu1 %v1715_v58, %s3879_s13 }
 0xdba   :  { %v1614_v61 = vpop.permute.xlu0 %1613 }
 0xdbb   :  { %v1616_v62 = vmul.f32 %v3816_v43, %v1614_v61 }
 0xdbd   :  { %1618 = vrot.lane.b32.xlu0 %v1616_v62, %s3880_s7 }
 0xdc2   :  { %v1718_v63 = vpop.permute.xlu1 %1717 }
 0xdc3   :  { %v1720_v0 = vmul.f32 %v3818_v48, %v1718_v63 }
 0xdc5   :  { %1722 = vrot.lane.b32.xlu1 %v1720_v0, %s3880_s7 }
 0xe2f   :  { %v1619_v15 = vpop.permute.xlu0 %1618 }
 0xe30   :  { %v1621_v1 = vadd.f32 %v3820_v55, %v1619_v15 }
 0xe32   :  { %1727 = vrot.lane.b32.xlu0 %v1621_v1, %s3878_s10 }
 0xe37   :  { %v1723_v42 = vpop.permute.xlu1 %1722 }
 0xe38   :  { %v1725_v2 = vadd.f32 %v3822_v57, %v1723_v42 }
 0xe3a   :  { %1831 = vrot.lane.b32.xlu1 %v1725_v2, %s3878_s10 }
 0xea4   :  { %v1728_v5 = vpop.permute.xlu0 %1727 }
 0xea5   :  { %3402 = vmatmul.mubr.msk.f32.vlgmr.msra.gmra.mrb[22].mxu1 %vm900_vm0, %v1728_v5 }
 0xea6   :  { %3693 = vmatpush3.bf16.msra.mxu1 %v4307_v59  ;;  %3423 = vmatprep.mubr.msk.f32.mxu1 %vm3877_vm14, %v3873_v3 }
 0xea7   :  { %3694 = vmatprep.subr.bf16.mxu1 %v3875_v14 }
 0xeaa   :  { %3696 = vmatpush3.bf16.msra.mxu1 %v4328_v4 }
 0xeab   :  { %3703 = vmatprep.subr.bf16.mxu1 %v3875_v14 }
 0xeac   :  { %v1832_v8 = vpop.permute.xlu1 %1831 }
 0xead   :  { %3413 = vmatmul.mubr.msk.f32.vlgmr.msra.gmra.mrb[30].mxu0 %vm900_vm0, %v1832_v8 }
 0xeae   :  { %3699 = vmatpush3.bf16.msra.mxu0 %v4309_v60  ;;  %3434 = vmatprep.mubr.msk.f32.mxu0 %vm3877_vm14, %v3873_v3 }
 0xeaf   :  { %3700 = vmatprep.subr.bf16.mxu0 %v3875_v14 }
 0xeb2   :  { %3702 = vmatpush3.bf16.msra.mxu0 %v4332_v6 }
 0xeb3   :  { %3709 = vmatprep.subr.bf16.mxu0 %v3875_v14 }
 0xf78   :  { %v1797_v9 = vpop.f32.mrb[22].mxu1 }
 0xf79   :  { %v1798_v10 = vadd.f32 %v4397_v35, %v1797_v9  ;;  %v3403_v12 = vpop.f32.mrb[23].mxu1 }
 0xf7b   :  { %1809 = vrot.lane.b32.xlu0 %v1798_v10, %s3878_s10  ;;  %v1801_v16 = vadd.f32 %v1798_v10, %v4382_v26 }
 0xf7d   :  { %v3046_v18 = vmul.f32 -1.442695, %v1801_v16 }
 0xf7f   :  { %3823 = vpow2.f32 %v3046_v18 }
 0xf80   :  { %v1901_v17 = vpop.f32.mrb[30].mxu0 }
 0xf81   :  { %v1902_v13 = vadd.f32 %v4410_v46, %v1901_v17  ;;  %v3414_v39 = vpop.f32.mrb[31].mxu0 }
 0xf83   :  { %1913 = vrot.lane.b32.xlu1 %v1902_v13, %s3878_s10  ;;  %v1905_v19 = vadd.f32 %v1902_v13, %v4388_v32 }
 0xf85   :  { %v3048_v20 = vmul.f32 -1.442695, %v1905_v19 }
 0xf87   :  { %3825 = vpow2.f32 %v3048_v20 }
 0xf89   :  { %v3824_v11 = vpop.eup %3823 }
 0xf8a   :  { %v1805_v22 = vadd.f32 1.0, %v3824_v11 }
 0xf8c   :  { %3827 = vrcp.f32 %v1805_v22 }
 0xf91   :  { %v3826_v45 = vpop.eup %3825 }
 0xf92   :  { %v1909_v24 = vadd.f32 1.0, %v3826_v45 }
 0xf94   :  { %3829 = vrcp.f32 %v1909_v24 }
 0xf96   :  { %v3828_v28 = vpop.eup %3827 }
 0xf9e   :  { %v3830_v33 = vpop.eup %3829 }
 0xfed   :  { %v1810_v29 = vpop.permute.xlu0 %1809 }
 0xfee   :  { %v1812_v31 = vmul.f32 %v3828_v28, %v1810_v29 }
 0xff0   :  { %1814 = vrot.lane.b32.xlu0 %v1812_v31, %s3878_s10 }
 0xff5   :  { %v1914_v36 = vpop.permute.xlu1 %1913 }
 0xff6   :  { %v1916_v37 = vmul.f32 %v3830_v33, %v1914_v36 }
 0xff8   :  { %1918 = vrot.lane.b32.xlu1 %v1916_v37, %s3878_s10 }
0x1062   :  { %v1815_v38 = vpop.permute.xlu0 %1814 }
0x1063   :  { %v1817_v40 = vadd.f32 %v1815_v38, %v4382_v26 }
0x1065   :  { %3831 = vtanh.f32 %v1817_v40 }
0x106a   :  { %v1919_v41 = vpop.permute.xlu1 %1918 }
0x106b   :  { %v1921_v43 = vadd.f32 %v1919_v41, %v4388_v32 }
0x106d   :  { %3833 = vtanh.f32 %v1921_v43 }
0x106f   :  { %v3832_v44 = vpop.eup %3831 }
0x1070   :  { %v1819_v47 = vsub.f32 %v1621_v1, %v3832_v44 }
0x1072   :  { %1821 = vrot.lane.b32.xlu0 %v1819_v47, %s3879_s13 }
0x1077   :  { %v3834_v48 = vpop.eup %3833 }
0x1078   :  { %v1923_v49 = vsub.f32 %v1725_v2, %v3834_v48 }
0x107a   :  { %1925 = vrot.lane.b32.xlu1 %v1923_v49, %s3879_s13 }
0x10e4   :  { %v1822_v50 = vpop.permute.xlu0 %1821 }
0x10e5   :  { %v1824_v51 = vmul.f32 %v3828_v28, %v1822_v50 }
0x10e7   :  { %1826 = vrot.lane.b32.xlu0 %v1824_v51, %s3880_s7 }
0x10ec   :  { %v1926_v52 = vpop.permute.xlu1 %1925 }
0x10ed   :  { %v1928_v53 = vmul.f32 %v3830_v33, %v1926_v52 }
0x10ef   :  { %1930 = vrot.lane.b32.xlu1 %v1928_v53, %s3880_s7 }
0x1159   :  { %v1827_v26 = vpop.permute.xlu0 %1826 }
0x115a   :  { %v1829_v54 = vadd.f32 %v3832_v44, %v1827_v26 }
0x115c   :  { %1935 = vrot.lane.b32.xlu0 %v1829_v54, %s3878_s10 }
0x1161   :  { %v1931_v32 = vpop.permute.xlu1 %1930 }
0x1162   :  { %v1933_v55 = vadd.f32 %v3834_v48, %v1931_v32 }
0x1164   :  { %2039 = vrot.lane.b32.xlu1 %v1933_v55, %s3878_s10 }
0x11ce   :  { %v1936_v56 = vpop.permute.xlu0 %1935 }
0x11cf   :  { %3424 = vmatmul.mubr.msk.f32.vlgmr.msra.gmra.mrb[24].mxu1 %vm900_vm0, %v1936_v56 }
0x11d0   :  { %3705 = vmatpush3.bf16.msra.mxu1 %v4307_v59  ;;  %3445 = vmatprep.mubr.msk.f32.mxu1 %vm3877_vm14, %v3873_v3 }
0x11d1   :  { %3706 = vmatprep.subr.bf16.mxu1 %v3875_v14 }
0x11d4   :  { %3708 = vmatpush3.bf16.msra.mxu1 %v4328_v4 }
0x11d5   :  { %3715 = vmatprep.subr.bf16.mxu1 %v3875_v14 }
0x11d6   :  { %v2040_v57 = vpop.permute.xlu1 %2039 }
0x11d7   :  { %3435 = vmatmul.mubr.msk.f32.vlgmr.msra.gmra.mrb[32].mxu0 %vm900_vm0, %v2040_v57 }
0x11d8   :  { %3711 = vmatpush3.bf16.msra.mxu0 %v4309_v60  ;;  %3456 = vmatprep.mubr.msk.f32.mxu0 %vm3877_vm14, %v3873_v3 }
0x11d9   :  { %3712 = vmatprep.subr.bf16.mxu0 %v3875_v14 }
0x11dc   :  { %3714 = vmatpush3.bf16.msra.mxu0 %v4332_v6 }
0x11dd   :  { %3721 = vmatprep.subr.bf16.mxu0 %v3875_v14 }
0x12a2   :  { %v2005_v58 = vpop.f32.mrb[24].mxu1 }
0x12a3   :  { %v2006_v61 = vadd.f32 %v4397_v35, %v2005_v58  ;;  %v3425_v62 = vpop.f32.mrb[25].mxu1 }
0x12a5   :  { %2017 = vrot.lane.b32.xlu0 %v2006_v61, %s3878_s10  ;;  %v2009_v1 = vadd.f32 %v2006_v61, %v4378_v21 }
0x12a7   :  { %v3050_v42 = vmul.f32 -1.442695, %v2009_v1 }
0x12a9   :  { %3835 = vpow2.f32 %v3050_v42 }
0x12aa   :  { %v2109_v63 = vpop.f32.mrb[32].mxu0 }
0x12ab   :  { %v2110_v0 = vadd.f32 %v4410_v46, %v2109_v63  ;;  %v3436_v15 = vpop.f32.mrb[33].mxu0 }
0x12ad   :  { %2121 = vrot.lane.b32.xlu1 %v2110_v0, %s3878_s10  ;;  %v2113_v2 = vadd.f32 %v2110_v0, %v4392_v34 }
0x12af   :  { %v3052_v5 = vmul.f32 -1.442695, %v2113_v2 }
0x12b1   :  { %3837 = vpow2.f32 %v3052_v5 }
0x12b3   :  { %v3836_v8 = vpop.eup %3835 }
0x12b4   :  { %v2013_v9 = vadd.f32 1.0, %v3836_v8 }
0x12b6   :  { %3839 = vrcp.f32 %v2013_v9 }
0x12bb   :  { %v3838_v10 = vpop.eup %3837 }
0x12bc   :  { %v2117_v12 = vadd.f32 1.0, %v3838_v10 }
0x12be   :  { %3841 = vrcp.f32 %v2117_v12 }
0x12c0   :  { %v3840_v17 = vpop.eup %3839 }
0x12c8   :  { %v3842_v16 = vpop.eup %3841 }
0x1317   :  { %v2018_v13 = vpop.permute.xlu0 %2017 }
0x1318   :  { %v2020_v39 = vmul.f32 %v3840_v17, %v2018_v13 }
0x131a   :  { %2022 = vrot.lane.b32.xlu0 %v2020_v39, %s3878_s10 }
0x131f   :  { %v2122_v18 = vpop.permute.xlu1 %2121 }
0x1320   :  { %v2124_v19 = vmul.f32 %v3842_v16, %v2122_v18  ;;  %v2558_v18 = vld [vmem:[%s4760_s14] sm:$0xff] }
0x1322   :  { %2126 = vrot.lane.b32.xlu1 %v2124_v19, %s3878_s10  ;;  %v2559_v19 = vld [vmem:[%s4760_s14 + $0x8] sm:$0xff] }
0x138c   :  { %v2023_v20 = vpop.permute.xlu0 %2022 }
0x138d   :  { %v2025_v11 = vadd.f32 %v2023_v20, %v4378_v21  ;;  %v3734_v20 = vpack.c.bf16 %v2559_v19, %v2558_v18  ;;  %v2721_v19 = vld [vmem:[%s4763_s16 + $0x10] sm:$0xff] }
0x138f   :  { %3843 = vtanh.f32 %v2025_v11  ;;  %v2560_v11 = vld [vmem:[%s4760_s14 + $0x10] sm:$0xff] }
0x1394   :  { %v2127_v22 = vpop.permute.xlu1 %2126 }
0x1395   :  { %v2129_v45 = vadd.f32 %v2127_v22, %v4392_v34  ;;  %v2561_v22 = vld [vmem:[%s4760_s14 + $0x18] sm:$0xff] }
0x1397   :  { %3845 = vtanh.f32 %v2129_v45 }
0x1399   :  { %v3844_v24 = vpop.eup %3843 }
0x139a   :  { %v2027_v28 = vsub.f32 %v1829_v54, %v3844_v24 }
0x139c   :  { %2029 = vrot.lane.b32.xlu0 %v2027_v28, %s3879_s13  ;;  %v2562_v28 = vld [vmem:[%s4760_s14 + $0x20] sm:$0xff] }
0x13a1   :  { %v3846_v29 = vpop.eup %3845 }
0x13a2   :  { %v2131_v31 = vsub.f32 %v1933_v55, %v3846_v29 }
0x13a4   :  { %2133 = vrot.lane.b32.xlu1 %v2131_v31, %s3879_s13 }
0x140e   :  { %v2030_v33 = vpop.permute.xlu0 %2029 }
0x140f   :  { %v2032_v36 = vmul.f32 %v3840_v17, %v2030_v33  ;;  %v2564_v33 = vld [vmem:[%s4760_s14 + $0x30] sm:$0xff] }
0x1411   :  { %2034 = vrot.lane.b32.xlu0 %v2032_v36, %s3880_s7  ;;  %v2565_v36 = vld [vmem:[%s4760_s14 + $0x38] sm:$0xff] }
0x1416   :  { %v2134_v37 = vpop.permute.xlu1 %2133 }
0x1417   :  { %v2136_v38 = vmul.f32 %v3842_v16, %v2134_v37  ;;  %v2986_v37 = vld [vmem:[%s4761_s8] ss:$0 sm:$0xff] }
0x1419   :  { %2138 = vrot.lane.b32.xlu1 %v2136_v38, %s3880_s7  ;;  %v3743_v38 = vpack.c.bf16 %v2565_v36, %v2564_v33  ;;  %v2886_v36 = vld [vmem:[%s4766_s19 + $0x10] sm:$0xff] }
0x1483   :  { %v2035_v21 = vpop.permute.xlu0 %2034 }
0x1484   :  { %v2037_v40 = vadd.f32 %v3844_v24, %v2035_v21  ;;  %v3737_v24 = vpack.c.bf16 %v2561_v22, %v2560_v11  ;;  %v425_v21 = vadd.f32 %v2986_v37, %v4364_v7 }
0x1486   :  { %2143 = vrot.lane.b32.xlu0 %v2037_v40, %s3878_s10 }
0x148b   :  { %v2139_v34 = vpop.permute.xlu1 %2138 }
0x148c   :  { %v2141_v41 = vadd.f32 %v3846_v29, %v2139_v34  ;;  %v2563_v29 = vld [vmem:[%s4760_s14 + $0x28] sm:$0xff] }
0x148d   :  { %v3740_v31 = vpack.c.bf16 %v2563_v29, %v2562_v28  ;;  %v2799_v28 = vld [vmem:[%s4765_s2] sm:$0xff] }
0x148e   :  { %2247 = vrot.lane.b32.xlu1 %v2141_v41, %s3878_s10  ;;  %v2884_v29 = vld [vmem:[%s4766_s19] sm:$0xff] }
0x14f8   :  { %v2144_v43 = vpop.permute.xlu0 %2143 }
0x14f9   :  { %3446 = vmatmul.mubr.msk.f32.vlgmr.msra.gmra.mrb[26].mxu1 %vm900_vm0, %v2144_v43 }
0x14fa   :  { %3717 = vmatpush3.bf16.msra.mxu1 %v4307_v59  ;;  %3467 = vmatprep.mubr.msk.f32.mxu1 %vm3877_vm14, %v3873_v3 }
0x14fb   :  { %3718 = vmatprep.subr.bf16.mxu1 %v3875_v14 }
0x14fe   :  { %3720 = vmatpush3.bf16.msra.mxu1 %v4328_v4 }
0x14ff   :  { %3727 = vmatprep.subr.bf16.mxu1 %v3875_v14 }
0x1500   :  { %v2248_v44 = vpop.permute.xlu1 %2247 }
0x1501   :  { %3457 = vmatmul.mubr.msk.f32.vlgmr.msra.gmra.mrb[34].mxu0 %vm900_vm0, %v2248_v44 }
0x1502   :  { %3723 = vmatpush3.bf16.msra.mxu0 %v4309_v60  ;;  %3478 = vmatprep.mubr.msk.f32.mxu0 %vm3877_vm14, %v3873_v3 }
0x1503   :  { %3724 = vmatprep.subr.bf16.mxu0 %v3875_v14 }
0x1506   :  { %3726 = vmatpush3.bf16.msra.mxu0 %v4332_v6 }
0x1507   :  { %3733 = vmatprep.subr.bf16.mxu0 %v3875_v14 }
0x15cc   :  { %v2213_v59 = vpop.f32.mrb[26].mxu1 }
0x15cd   :  { %v2214_v47 = vadd.f32 %v4397_v35, %v2213_v59  ;;  %v3447_v4 = vpop.f32.mrb[27].mxu1 }
0x15cf   :  { %2225 = vrot.lane.b32.xlu0 %v2214_v47, %s3878_s10  ;;  %v2217_v60 = vadd.f32 %v2214_v47, %v4390_v25 }
0x15d1   :  { %v3054_v51 = vmul.f32 -1.442695, %v2217_v60 }
0x15d3   :  { %3847 = vpow2.f32 %v3054_v51 }
0x15d4   :  { %v2317_v48 = vpop.f32.mrb[34].mxu0 }
0x15d5   :  { %v2318_v49 = vadd.f32 %v4410_v46, %v2317_v48  ;;  %v3458_v50 = vpop.f32.mrb[35].mxu0 }
0x15d7   :  { %2329 = vrot.lane.b32.xlu1 %v2318_v49, %s3878_s10  ;;  %v2321_v6 = vadd.f32 %v2318_v49, %v4380_v23 }
0x15d9   :  { %v3056_v52 = vmul.f32 -1.442695, %v2321_v6 }
0x15db   :  { %3849 = vpow2.f32 %v3056_v52 }
0x15dd   :  { %v3848_v53 = vpop.eup %3847 }
0x15de   :  { %v2221_v26 = vadd.f32 1.0, %v3848_v53 }
0x15e0   :  { %3851 = vrcp.f32 %v2221_v26 }
0x15e5   :  { %v3850_v54 = vpop.eup %3849 }
0x15e6   :  { %v2325_v32 = vadd.f32 1.0, %v3850_v54 }
0x15e8   :  { %3853 = vrcp.f32 %v2325_v32 }
0x15ea   :  { %v3852_v55 = vpop.eup %3851 }
0x15f2   :  { %v3854_v58 = vpop.eup %3853 }
0x1641   :  { %v2226_v56 = vpop.permute.xlu0 %2225 }
0x1642   :  { %v2228_v57 = vmul.f32 %v3852_v55, %v2226_v56 }
0x1644   :  { %2230 = vrot.lane.b32.xlu0 %v2228_v57, %s3878_s10 }
0x1649   :  { %v2330_v61 = vpop.permute.xlu1 %2329 }
0x164a   :  { %v2332_v62 = vmul.f32 %v3854_v58, %v2330_v61 }
0x164c   :  { %2334 = vrot.lane.b32.xlu1 %v2332_v62, %s3878_s10 }
0x16b6   :  { %v2231_v63 = vpop.permute.xlu0 %2230 }
0x16b7   :  { %v2233_v0 = vadd.f32 %v2231_v63, %v4390_v25 }
0x16b9   :  { %3855 = vtanh.f32 %v2233_v0 }
0x16be   :  { %v2335_v15 = vpop.permute.xlu1 %2334 }
0x16bf   :  { %v2337_v1 = vadd.f32 %v2335_v15, %v4380_v23 }
0x16c1   :  { %3857 = vtanh.f32 %v2337_v1 }
0x16c3   :  { %v3856_v42 = vpop.eup %3855 }
0x16c4   :  { %v2235_v2 = vsub.f32 %v2037_v40, %v3856_v42  ;;  %v428_v40 = vmax.f32 %v425_v21, 0.0  ;;  %v2889_v21 = vld [vmem:[%s4766_s19 + $0x28] sm:$0xff] }
0x16c6   :  { %2237 = vrot.lane.b32.xlu0 %v2235_v2, %s3879_s13  ;;  %v2568_v2 = vld [vmem:[%s4762_s15 + $0x10] sm:$0xff] }
0x16cb   :  { %v3858_v5 = vpop.eup %3857 }
0x16cc   :  { %v2339_v8 = vsub.f32 %v2141_v41, %v3858_v5 }
0x16ce   :  { %2341 = vrot.lane.b32.xlu1 %v2339_v8, %s3879_s13  ;;  %v2569_v8 = vld [vmem:[%s4762_s15 + $0x18] sm:$0xff] }
0x1738   :  { %v2238_v9 = vpop.permute.xlu0 %2237 }
0x1739   :  { %v2240_v10 = vmul.f32 %v3852_v55, %v2238_v9  ;;  %v3731_v9 = vpack.c.bf16 %v2569_v8, %v2568_v2 }
0x173b   :  { %2242 = vrot.lane.b32.xlu0 %v2240_v10, %s3880_s7 }
0x1740   :  { %v2342_v12 = vpop.permute.xlu1 %2341 }
0x1741   :  { %v2344_v17 = vmul.f32 %v3854_v58, %v2342_v12 }
0x1743   :  { %2346 = vrot.lane.b32.xlu1 %v2344_v17, %s3880_s7 }
0x17ad   :  { %v2243_v25 = vpop.permute.xlu0 %2242 }
0x17ae   :  { %v4600_v13 = vadd.f32 %v3856_v42, %v2243_v25 }
0x17b0   :  { %2351 = vrot.lane.b32.xlu0 %v4600_v13, %s3878_s10 }
0x17b5   :  { %v2347_v23 = vpop.permute.xlu1 %2346 }
0x17b6   :  { %v4604_v39 = vadd.f32 %v3858_v5, %v2347_v23 }
0x17b8   :  { %2455 = vrot.lane.b32.xlu1 %v4604_v39, %s3878_s10 }
0x1822   :  { %v2352_v16 = vpop.permute.xlu0 %2351 }
0x1823   :  { %3468 = vmatmul.mubr.msk.f32.vlgmr.msra.gmra.mrb[28].mxu1 %vm900_vm0, %v2352_v16  ;;  %v2720_v16 = vld [vmem:[%s4763_s16 + $0x8] sm:$0xff] }
0x1824   :  { %3489 = vmatprep.mubr.msk.f32.mxu1 %vm3877_vm14, %v3873_v3 }
0x182a   :  { %v2456_v45 = vpop.permute.xlu1 %2455 }
0x182b   :  { %3479 = vmatmul.mubr.msk.f32.vlgmr.msra.gmra.mrb[36].mxu0 %vm900_vm0, %v2456_v45  ;;  %v2800_v45 = vld [vmem:[%s4764_s17] sm:$0xff] }
0x182c   :  { %3735 = vmatpush3.bf16.msra.mxu0 %v3734_v20  ;;  %3508 = vmatprep.mubr.msk.f32.mxu0 %vm3877_vm14, %v3873_v3  ;;  %v2722_v20 = vld [vmem:[%s4763_s16 + $0x18] sm:$0xff] }
0x182d   :  { %3736 = vmatprep.subr.bf16.mxu0 %v3875_v14  ;;  %v3749_v22 = vpack.c.bf16 %v2722_v20, %v2721_v19 }
0x1830   :  { %3738 = vmatpush3.bf16.msra.mxu0 %v3737_v24 }
0x1831   :  { %3739 = vmatprep.subr.bf16.mxu0 %v3875_v14 }
0x1834   :  { %3741 = vmatpush3.bf16.msra.mxu0 %v3740_v31  ;;  %v2885_v31 = vld [vmem:[%s4766_s19 + $0x8] sm:$0xff] }
0x1835   :  { %3742 = vmatprep.subr.bf16.mxu0 %v3875_v14  ;;  %v3752_v33 = vpack.c.bf16 %v2885_v31, %v2884_v29 }
0x1838   :  { %3744 = vmatpush3.bf16.msra.mxu0 %v3743_v38  ;;  %v2888_v38 = vld [vmem:[%s4766_s19 + $0x20] sm:$0xff] }
0x183b   :  { %3509 = vmatmul.mubr.msk.f32.vlgmr.msra.gmra.mrb[38].mxu0 %vm2645_vm1, %v428_v40  ;;  %v3758_v40 = vpack.c.bf16 %v2889_v21, %v2888_v38 }
0x18f6   :  { %v2421_v34 = vpop.f32.mrb[28].mxu1 }
0x18f7   :  { %v2422_v41 = vadd.f32 %v4397_v35, %v2421_v34  ;;  %v3469_v43 = vpop.f32.mrb[29].mxu1  ;;  %v2890_v34 = vld [vmem:[%s4766_s19 + $0x30] sm:$0xff] }
0x18f9   :  { %2433 = vrot.lane.b32.xlu0 %v2422_v41, %s3878_s10  ;;  %v2425_v48 = vadd.f32 %v2422_v41, %v4386_v30  ;;  %v2891_v41 = vld [vmem:[%s4766_s19 + $0x38] sm:$0xff] }
0x18fa   :  { %v3761_v43 = vpack.c.bf16 %v2891_v41, %v2890_v34 }
0x18fb   :  { %v3058_v49 = vmul.f32 -1.442695, %v2425_v48 }
0x18fd   :  { %3859 = vpow2.f32 %v3058_v49 }
0x18fe   :  { %v2525_v44 = vpop.f32.mrb[36].mxu0 }
0x18ff   :  { %v2526_v59 = vadd.f32 %v4410_v46, %v2525_v44  ;;  %v3480_v47 = vpop.f32.mrb[37].mxu0 }
0x1901   :  { %2537 = vrot.lane.b32.xlu1 %v2526_v59, %s3878_s10  ;;  %v2529_v50 = vadd.f32 %v2526_v59, %v4384_v27 }
0x1903   :  { %v3060_v60 = vmul.f32 -1.442695, %v2529_v50 }
0x1905   :  { %3861 = vpow2.f32 %v3060_v60  ;;  %v3065_v60 = vld [vmem:[%s4767_s18] ss:$0 sm:$0xff] }
0x1907   :  { %v3860_v35 = vpop.eup %3859 }
0x1908   :  { %v2429_v51 = vadd.f32 1.0, %v3860_v35 }
0x190a   :  { %3863 = vrcp.f32 %v2429_v51 }
0x190e   :  { %v4650_v7 = vpop.f32.mrb[38].mxu0 }
0x190f   :  { %v3510_v4 = vpop.f32.mrb[39].mxu0  ;;  %v3862_v6 = vpop.eup %3861 }
0x1910   :  { %v2533_v52 = vadd.f32 1.0, %v3862_v6 }
0x1912   :  { %3865 = vrcp.f32 %v2533_v52 }
0x1914   :  { %v3864_v46 = vpop.eup %3863 }
0x191c   :  { %v3866_v54 = vpop.eup %3865 }
0x196b   :  { %v2434_v53 = vpop.permute.xlu0 %2433 }
0x196c   :  { %v2436_v26 = vmul.f32 %v3864_v46, %v2434_v53 }
0x196e   :  { %2438 = vrot.lane.b32.xlu0 %v2436_v26, %s3878_s10 }
0x1973   :  { %v2538_v32 = vpop.permute.xlu1 %2537 }
0x1974   :  { %v2540_v55 = vmul.f32 %v3866_v54, %v2538_v32 }
0x1976   :  { %2542 = vrot.lane.b32.xlu1 %v2540_v55, %s3878_s10 }
0x19e0   :  { %v2439_v56 = vpop.permute.xlu0 %2438 }
0x19e1   :  { %v2441_v57 = vadd.f32 %v2439_v56, %v4386_v30  ;;  %v2566_v30 = vld [vmem:[%s4762_s15] sm:$0xff] }
0x19e3   :  { %3867 = vtanh.f32 %v2441_v57 }
0x19e8   :  { %v2543_v58 = vpop.permute.xlu1 %2542 }
0x19e9   :  { %v2545_v61 = vadd.f32 %v2543_v58, %v4384_v27  ;;  %v2567_v27 = vld [vmem:[%s4762_s15 + $0x8] sm:$0xff] }
0x19ea   :  { %v3728_v5 = vpack.c.bf16 %v2567_v27, %v2566_v30 }
0x19eb   :  { %3869 = vtanh.f32 %v2545_v61 }
0x19ec   :  { %3729 = vmatpush3.bf16.msra.mxu1 %v3728_v5 }
0x19ed   :  { %v3868_v62 = vpop.eup %3867  ;;  %3730 = vmatprep.subr.bf16.mxu1 %v3875_v14 }
0x19ee   :  { %v2443_v63 = vsub.f32 %v4600_v13, %v3868_v62 }
0x19f0   :  { %2445 = vrot.lane.b32.xlu0 %v2443_v63, %s3879_s13  ;;  %3732 = vmatpush3.bf16.msra.mxu1 %v3731_v9 }
0x19f1   :  { %3745 = vmatprep.subr.bf16.mxu1 %v3875_v14 }
0x19f5   :  { %v3870_v0 = vpop.eup %3869 }
0x19f6   :  { %v2547_v15 = vsub.f32 %v4604_v39, %v3870_v0  ;;  %v2719_v39 = vld [vmem:[%s4763_s16] sm:$0xff] }
0x19f7   :  { %v3746_v18 = vpack.c.bf16 %v2720_v16, %v2719_v39 }
0x19f8   :  { %2549 = vrot.lane.b32.xlu1 %v2547_v15, %s3879_s13 }
0x1a62   :  { %v2446_v1 = vpop.permute.xlu0 %2445 }
0x1a63   :  { %v2448_v42 = vmul.f32 %v3864_v46, %v2446_v1 }
0x1a65   :  { %2450 = vrot.lane.b32.xlu0 %v2448_v42, %s3880_s7 }
0x1a6a   :  { %v2550_v10 = vpop.permute.xlu1 %2549 }
0x1a6b   :  { %v2552_v12 = vmul.f32 %v3866_v54, %v2550_v10 }
0x1a6d   :  { %2554 = vrot.lane.b32.xlu1 %v2552_v12, %s3880_s7 }
0x1ad7   :  { %v2451_v17 = vpop.permute.xlu0 %2450 }
0x1ad8   :  { %v2453_v25 = vadd.f32 %v3868_v62, %v2451_v17 }
0x1ada   :  { %2571 = vrot.lane.b32.xlu0 %v2453_v25, %s3878_s10 }
0x1adf   :  { %v2555_v13 = vpop.permute.xlu1 %2554 }
0x1ae0   :  { %v2557_v23 = vadd.f32 %v3870_v0, %v2555_v13 }
0x1ae2   :  { %2724 = vrot.lane.b32.xlu1 %v2557_v23, %s3878_s10 }
0x1b4c   :  { %v2572_v11 = vpop.permute.xlu0 %2571 }
0x1b4d   :  { %3490 = vmatmul.mubr.msk.f32.vlgmr.msra.gmra.mrb[30].mxu1 %vm900_vm0, %v2572_v11 }
0x1b4e   :  { %3747 = vmatpush3.bf16.msra.mxu1 %v3746_v18  ;;  %3519 = vmatprep.mubr.msk.f32.mxu1 %vm3877_vm14, %v3873_v3 }
0x1b4f   :  { %3748 = vmatprep.subr.bf16.mxu1 %v3875_v14 }
0x1b52   :  { %3750 = vmatpush3.bf16.msra.mxu1 %v3749_v22 }
0x1b53   :  { %3522 = vmatprep.subr.mxu1 %v3873_v3 }
0x1b54   :  { %v2725_v24 = vpop.permute.xlu1 %2724 }
0x1b55   :  { %3520 = vmatmul.mubr.msk.f32.vlgmr.msra.gmra.mrb[32].mxu1 %vm900_vm0, %v2725_v24 }
0x1b56   :  { %3523 = vmatpush3.msra.mxu1 %v2800_v45  ;;  %3524 = vmatprep.mubr.msk.f32.mxu1 %vm3877_vm14, %v3873_v3 }
0x1b57   :  { %3751 = vmatprep.subr.bf16.mxu1 %v3875_v14 }
0x1b59   :  { %3525 = vmatmul.mubr.msk.f32.vlgmr.msra.gmra.mrb[34].mxu1 %vm631_vm15, %v2799_v28 }
0x1b5a   :  { %3543 = vmatprep.mubr.msk.f32.mxu1 %vm3877_vm14, %v3873_v3  ;;  %3753 = vmatpush3.bf16.msra.mxu1 %v3752_v33  ;;  %v2887_v3 = vld [vmem:[%s4766_s19 + $0x18] sm:$0xff] }
0x1b5b   :  { %3754 = vmatprep.subr.bf16.mxu1 %v3875_v14  ;;  %v3755_v37 = vpack.c.bf16 %v2887_v3, %v2886_v36 }
0x1b5e   :  { %3756 = vmatpush3.bf16.msra.mxu1 %v3755_v37 }
0x1b5f   :  { %3757 = vmatprep.subr.bf16.mxu1 %v3875_v14 }
0x1b62   :  { %3759 = vmatpush3.bf16.msra.mxu1 %v3758_v40 }
0x1b63   :  { %3760 = vmatprep.subr.bf16.mxu1 %v3875_v14  ;;  %v3066_v14 = vld [vmem:[%s4768_s20] ss:$0 sm:$0xff] }
0x1b66   :  { %3762 = vmatpush3.bf16.msra.mxu1 %v3761_v43 }
0x1c20   :  { %v2641_v44 = vpop.f32.mrb[30].mxu1 }
0x1c21   :  { %v2716_v59 = vadd.f32 %v4650_v7, %v2641_v44  ;;  %v3491_v47 = vpop.f32.mrb[31].mxu1 }
0x1c28   :  { %v2794_v4 = vpop.f32.mrb[32].mxu1 }
0x1c29   :  { %v2798_v48 = vadd.f32 %v2794_v4, %v2716_v59  ;;  %v3521_v49 = vpop.f32.mrb[33].mxu1 }
0x1c2c   :  { %v2870_v50 = vpop.f32.mrb[34].mxu1 }
0x1c2d   :  { %v2874_v35 = vadd.f32 %v2870_v50, %v2798_v48  ;;  %v3526_v51 = vpop.f32.mrb[35].mxu1 }
0x1c2f   :  { %v2882_v6 = vadd.f32 %v3065_v60, %v2874_v35 }
0x1c31   :  { %3871 = vtanh.f32 %v2882_v6 }
0x1c3b   :  { %v3872_v52 = vpop.eup %3871 }
0x1c3c   :  { %3544 = vmatmul.mubr.msk.f32.vlgmr.msra.gmra.mrb[36].mxu1 %vm2645_vm1, %v3872_v52 }
0x1d0f   :  { %v2968_v7 = vpop.f32.mrb[36].mxu1 }
0x1d10   :  { %v2969_v46 = vadd.f32 %v3066_v14, %v2968_v7  ;;  %v3545_v53 = vpop.f32.mrb[37].mxu1 }
0x1d12   :  { %2973 = vst.msk [vmem:[%s4769_s21] sm:$0xf] %vm2972_vm2, %v2969_v46 }

</bundles_post_ra>
